<compile_context>
chip_gen: v5e
topology: v5e:2x2
jax: 0.10.0
libtpu: 0.0.40
codegen_flags: <defaults>
</compile_context>

<pallas_src>
from functools import partial
from typing import Sequence

import numpy as np
import jax
import jax.numpy as jnp
from jax import lax
from jax.experimental import pallas as pl
from jax.experimental.pallas import tpu as pltpu


def _round_up(x: int, m: int) -> int:
    return ((x + m - 1) // m) * m


def _multi_ce_kernel(x_ref, t_ref, s_ref, st_ref, o_ref, acc_ref, *,
                     nvec_p: Sequence[int], batch: int, tile: int):
    """Accumulates sum over (valid packed rows, packed segments) of (lse - target logit).

    x_ref  : (TB, Cp) logits tile, native dtype, VMEM
    t_ref  : (TB, Kp) int32 absolute target columns (within the packed row), VMEM
    s_ref  : (Cp, Kp) f32 one-hot segment matrix (column -> segment), grid-resident
    st_ref : (Kp, Cp) f32 transposed segment matrix (segment -> columns), grid-resident
    o_ref  : (8, 128) f32 per-core output block; partial sum written at [0, 0]
    acc_ref: (TB, 1)  f32 per-row accumulator scratch
    """
    c = pl.program_id(0)
    i = pl.program_id(1)
    nb = pl.num_programs(1)
    TB, Cp = x_ref.shape
    Kp = len(nvec_p)

    @pl.when(i == 0)
    def _():
        acc_ref[...] = jnp.zeros_like(acc_ref)

    xm = x_ref[...]                               # native dtype for the max pass
    x = xm.astype(jnp.float32)

    # Row validity (ragged last block / clamped duplicate blocks contain garbage rows):
    # zero them BEFORE the exp so inf/NaN cannot appear; also mask the final loss.
    gt = c * nb + i                               # unclamped global tile index
    row_ids = gt * tile + lax.broadcasted_iota(jnp.int32, (TB, 1), 0)
    row_valid = row_ids < batch
    x = jnp.where(row_valid, x, jnp.float32(0.0))

    neg = jnp.asarray(jnp.finfo(xm.dtype).min, dtype=xm.dtype)
    col_row = lax.broadcasted_iota(jnp.int32, (1, Cp), 1)   # per-column iota (1 sublane)
    kp_row = lax.broadcasted_iota(jnp.int32, (1, Kp), 1)

    # Per-segment maxima -> (TB, Kp).  This masked max is the only remaining K-scaled
    # VALU pass (segment masks are built on a single (1, Cp) row).
    # TODO(synk): replace with a segmented roll/max tree on the XLU to drop it too.
    maxes = jnp.zeros((TB, Kp), jnp.float32)
    off = 0
    for k, n in enumerate(nvec_p):                # static unroll; nvec is compile-time
        seg = (col_row >= off) & (col_row < off + n)                        # (1, Cp)
        m_k = jnp.max(jnp.where(seg, xm, neg), axis=-1, keepdims=True)      # (TB, 1)
        maxes = maxes + jnp.where(kp_row == k, m_k.astype(jnp.float32),
                                  jnp.float32(0.0))                         # (TB, Kp)
        off += n

    st = st_ref[...]                              # (Kp, Cp) f32

    # Broadcast segment maxima back to their columns on the (otherwise idle) MXU.
    m_bcast = jnp.dot(maxes, st, preferred_element_type=jnp.float32)        # (TB, Cp)

    # Single exp pass over the whole tile (exponents <= 0 within every segment).
    e = jnp.exp(x - m_bcast)

    # Per-segment sums on the MXU: (TB, Cp) @ (Cp, Kp).
    seg_sums = jnp.dot(e, s_ref[...], preferred_element_type=jnp.float32)   # (TB, Kp)

    # Target gather: absolute target columns broadcast per column on the MXU, then a
    # single compare + masked lane reduce.
    t_abs = t_ref[...].astype(jnp.float32)                                  # (TB, Kp)
    tgt_bcast = jnp.dot(t_abs, st, preferred_element_type=jnp.float32)      # (TB, Cp)
    col_ids = lax.broadcasted_iota(jnp.int32, (TB, Cp), 1)
    tgt_mask = col_ids == tgt_bcast.astype(jnp.int32)
    tgt_sum = jnp.sum(jnp.where(tgt_mask, x, jnp.float32(0.0)),
                      axis=-1, keepdims=True)                               # (TB, 1)

    # Per-row loss summed over the (packed) sub-actions; zero invalid rows.
    row_loss = jnp.sum(maxes + jnp.log(seg_sums), axis=-1, keepdims=True) - tgt_sum
    row_loss = jnp.where(row_valid, row_loss, jnp.float32(0.0))

    # Per-row accumulator: a plain VPU add per step, one reduce at the very end.
    acc_ref[...] += row_loss

    @pl.when(i == nb - 1)
    def _():
        total = jnp.sum(acc_ref[...], axis=0, keepdims=True)                # (1, 1)
        sub = lax.broadcasted_iota(jnp.int32, o_ref.shape, 0)
        ln = lax.broadcasted_iota(jnp.int32, o_ref.shape, 1)
        o_ref[...] = jnp.where((sub == 0) & (ln == 0), total, jnp.float32(0.0))


def multi_cross_entropy_loss(inputs: jax.Array, targets: jax.Array,
                             nvec: Sequence[int], *, tile: int = None,
                             num_cores: int = 2) -> jax.Array:
    """inputs: (B, sum(nvec)) float logits; targets: (B, len(nvec)) ints.

    Returns the scalar f32 loss = mean over sub-actions of per-sub-action CE.
    `num_cores` shards the batch grid across TensorCores (2 on v7x; harmless on 1-TC).
    """
    nvec = [int(n) for n in nvec]
    B, C = inputs.shape
    K = len(nvec)
    assert C == sum(nvec), "channel dim must equal sum(nvec)"
    assert targets.shape == (B, K)

    # ---- Lane packing: (B, C) -> (B/r, r*C), free (metadata-only) reshape. ----
    r = 1
    if C <= 128:
        for cand in range(max(1, min(128 // C, B)), 0, -1):
            if B % cand == 0:
                r = cand
                break
    Bp, Cp, Kp = B // r, r * C, r * K
    nvec_p = tuple(nvec) * r

    x = inputs.reshape(Bp, Cp)

    # Absolute target columns inside the packed row (tiny wrapper precompute).
    offs = np.concatenate([[0], np.cumsum(nvec)])[:K].astype(np.int32)       # (K,)
    col_base = (np.arange(Kp, dtype=np.int32) // K) * C + np.tile(offs, r)   # (Kp,)
    t_abs = targets.reshape(Bp, Kp).astype(jnp.int32) + jnp.asarray(col_base)[None, :]

    # Static one-hot segment matrices.
    seg_ids = np.repeat(np.arange(Kp, dtype=np.int32), np.asarray(nvec_p))   # (Cp,)
    s_np = (seg_ids[:, None] == np.arange(Kp, dtype=np.int32)[None, :]).astype(np.float32)
    s_mat = jnp.asarray(s_np)            # (Cp, Kp): column -> segment
    st_mat = jnp.asarray(s_np.T)         # (Kp, Cp): segment -> columns

    # Tiny pad to a sublane multiple of packed rows (usually a no-op; at most 7 rows).
    Bp8 = _round_up(Bp, 8)
    if Bp8 != Bp:
        x = jnp.pad(x, ((0, Bp8 - Bp), (0, 0)))
        t_abs = jnp.pad(t_abs, ((0, Bp8 - Bp), (0, 0)))

    # Batch tile: large (amortizes ~0.35us/grid-step on 128 MiB parts) but capped so
    # ~10 live f32 copies of a (tile, Cp) block stay inside v7x's 64 MiB VMEM.
    lane_pad = max(128, _round_up(Cp, 128))
    cap = max(8, ((20 * 1024 * 1024) // (10 * lane_pad * 4)) // 8 * 8)
    if tile is None:
        tile = 1024
    tile = int(min(max(8, _round_up(int(tile), 8)), cap, Bp8))

    nb_total = (Bp8 + tile - 1) // tile
    ncores = max(1, min(int(num_cores), nb_total))
    nbpc = (nb_total + ncores - 1) // ncores

    # Clamp the block index for duplicate tiles (when nb_total % ncores != 0); their
    # rows fall past `batch` and are masked to zero in-kernel.
    def row_map(c, i):
        return (jnp.minimum(c * nbpc + i, nb_total - 1), 0)

    kernel = partial(_multi_ce_kernel, nvec_p=nvec_p, batch=Bp, tile=tile)

    out = pl.pallas_call(
        kernel,
        out_shape=jax.ShapeDtypeStruct((8 * ncores, 128), jnp.float32),
        grid=(ncores, nbpc),
        in_specs=[
            pl.BlockSpec((tile, Cp), row_map),             # logits tile (native dtype)
            pl.BlockSpec((tile, Kp), row_map),             # absolute target columns
            pl.BlockSpec((Cp, Kp), lambda c, i: (0, 0)),   # segment matrix (resident)
            pl.BlockSpec((Kp, Cp), lambda c, i: (0, 0)),   # transposed segment matrix
        ],
        out_specs=pl.BlockSpec((8, 128), lambda c, i: (c, 0)),
        scratch_shapes=[pltpu.VMEM((tile, 1), jnp.float32)],
        compiler_params=pltpu.CompilerParams(
            dimension_semantics=("parallel", "arbitrary"),
            vmem_limit_bytes=32 * 1024 * 1024,
        ),
    )(x, t_abs, s_mat, st_mat)

    # Each core wrote its partial sum at [0, 0] of its (8, 128) block; rest is zeros.
    return jnp.sum(out) / jnp.float32(B * K)


def _reference(inputs, targets, nvec):
    """Pure-JAX reference matching nn.CrossEntropyLoss per split, then mean."""
    losses = []
    off = 0
    for k, n in enumerate(nvec):
        logits = inputs[:, off:off + n].astype(jnp.float32)
        tgt = targets[:, k]
        logp = jax.nn.log_softmax(logits, axis=-1)
        losses.append(-jnp.mean(jnp.take_along_axis(logp, tgt[:, None], axis=-1)))
        off += n
    return jnp.mean(jnp.stack(losses))


if __name__ == "__main__":
    # MultiDiscrete action space, e.g. spaces.MultiDiscrete([3, 5, 4]).
    nvec = [3, 5, 4]
    B = 400                      # packs to (40, 120): lane-dense rows, no wrapper pad
    C = sum(nvec)

    key = jax.random.PRNGKey(0)
    k1, k2 = jax.random.split(key)
    inputs = jax.random.normal(k1, (B, C), dtype=jnp.float32)
    targets = jnp.stack(
        [jax.random.randint(jax.random.fold_in(k2, k), (B,), 0, n)
         for k, n in enumerate(nvec)], axis=-1).astype(jnp.int32)

    # tile=16 -> 3 batch tiles on a (2, 2) grid: exercises the grid-carried accumulator,
    # a ragged last block (garbage rows masked) and a clamped duplicate block.
    loss = multi_cross_entropy_loss(inputs, targets, nvec, tile=16)
    loss = jax.block_until_ready(loss)

    ref = _reference(inputs, targets, nvec)
    assert jnp.allclose(loss, ref, atol=5e-5, rtol=5e-5), (loss, ref)

    print("KERNEL_OK")
</pallas_src>

<mosaic_0001>
module attributes {stable_mosaic.version = 11 : i64} {
  func.func @_multi_ce_kernel(%arg0: i32, %arg1: i32, %arg2: memref<16x120xf32, #tpu.memory_space<vmem>>, %arg3: memref<16x30xi32, #tpu.memory_space<vmem>>, %arg4: memref<120x30xf32, #tpu.memory_space<vmem>>, %arg5: memref<30x120xf32, #tpu.memory_space<vmem>>, %arg6: memref<8x128xf32, #tpu.memory_space<vmem>>, %arg7: memref<16x1xf32, #tpu.memory_space<vmem>>) attributes {dimension_semantics = [#tpu.dimension_semantics<parallel>, #tpu.dimension_semantics<arbitrary>], iteration_bounds = array<i64: 2, 2>, scalar_prefetch = 0 : i64, scratch_operands = 1 : i64, tpu.core_type = #tpu.core_type<tc>, window_params = [{transform_indices = @transform_0, window_bounds = array<i64: 16, 120>}, {transform_indices = @transform_1, window_bounds = array<i64: 16, 30>}, {pipeline_mode = #tpu.pipeline_mode<synchronous>, transform_indices = @transform_2, window_bounds = array<i64: 120, 30>}, {pipeline_mode = #tpu.pipeline_mode<synchronous>, transform_indices = @transform_3, window_bounds = array<i64: 30, 120>}, {transform_indices = @transform_4, window_bounds = array<i64: 8, 128>}]} {
    %c0_i32 = arith.constant 0 : i32
    %0 = arith.cmpi eq, %arg1, %c0_i32 : i32
    %1 = arith.extui %0 : i1 to i32
    %c0_i32_0 = arith.constant 0 : i32
    %2 = arith.cmpi ne, %1, %c0_i32_0 : i32
    scf.if %2 {
      %cst_152 = arith.constant 0.000000e+00 : f32
      %648 = vector.broadcast %cst_152 : f32 to vector<16x1xf32>
      %c0_153 = arith.constant 0 : index
      %c0_154 = arith.constant 0 : index
      %649 = vector.load %arg7[%c0_153, %c0_154] : memref<16x1xf32, #tpu.memory_space<vmem>>, vector<16x1xf32>
      tpu.vector_store %arg7[%c0_153, %c0_154], %648 {strides = array<i32>} : memref<16x1xf32, #tpu.memory_space<vmem>>, vector<16x1xf32>,
    } else {
    }
    %c0 = arith.constant 0 : index
    %c0_1 = arith.constant 0 : index
    %3 = vector.load %arg2[%c0, %c0_1] : memref<16x120xf32, #tpu.memory_space<vmem>>, vector<16x120xf32>
    %c2_i32 = arith.constant 2 : i32
    %4 = arith.muli %arg0, %c2_i32 : i32
    %5 = arith.addi %4, %arg1 : i32
    %c16_i32 = arith.constant 16 : i32
    %6 = arith.muli %5, %c16_i32 : i32
    %7 = tpu.iota {dimensions = array<i32: 0>} : vector<16x1xi32>
    %8 = vector.broadcast %6 : i32 to vector<16x1xi32>
    %9 = arith.addi %8, %7 : vector<16x1xi32>
    %c40_i32 = arith.constant 40 : i32
    %10 = vector.broadcast %c40_i32 : i32 to vector<16x1xi32>
    %11 = arith.cmpi slt, %9, %10 : vector<16x1xi32>
    %cst = arith.constant 0.000000e+00 : f32
    %12 = vector.shape_cast %11 : vector<16x1xi1> to vector<16x1xi1>
    %13 = vector.broadcast %12 : vector<16x1xi1> to vector<16x120xi1>
    %14 = vector.broadcast %cst : f32 to vector<16x120xf32>
    %15 = arith.select %13, %3, %14 : vector<16x120xi1>, vector<16x120xf32>
    %16 = tpu.iota {dimensions = array<i32: 1>} : vector<1x120xi32>
    %17 = tpu.iota {dimensions = array<i32: 1>} : vector<1x30xi32>
    %cst_2 = arith.constant 0.000000e+00 : f32
    %18 = vector.broadcast %cst_2 : f32 to vector<16x30xf32>
    %c0_i32_3 = arith.constant 0 : i32
    %19 = vector.broadcast %c0_i32_3 : i32 to vector<1x120xi32>
    %20 = arith.cmpi sge, %16, %19 : vector<1x120xi32>
    %c3_i32 = arith.constant 3 : i32
    %21 = vector.broadcast %c3_i32 : i32 to vector<1x120xi32>
    %22 = arith.cmpi slt, %16, %21 : vector<1x120xi32>
    %23 = arith.andi %20, %22 : vector<1x120xi1>
    %cst_4 = arith.constant -3.40282347E+38 : f32
    %24 = vector.shape_cast %23 : vector<1x120xi1> to vector<1x120xi1>
    %25 = vector.broadcast %24 : vector<1x120xi1> to vector<16x120xi1>
    %26 = vector.broadcast %cst_4 : f32 to vector<16x120xf32>
    %27 = arith.select %25, %3, %26 : vector<16x120xi1>, vector<16x120xf32>
    %cst_5 = arith.constant dense<0xFF800000> : vector<16xf32>
    %28 = vector.multi_reduction <maximumf>, %27, %cst_5 [1] : vector<16x120xf32> to vector<16xf32>
    %29 = vector.shape_cast %28 : vector<16xf32> to vector<16x1xf32>
    %c0_i32_6 = arith.constant 0 : i32
    %30 = vector.broadcast %c0_i32_6 : i32 to vector<1x30xi32>
    %31 = arith.cmpi eq, %17, %30 : vector<1x30xi32>
    %cst_7 = arith.constant 0.000000e+00 : f32
    %32 = vector.shape_cast %31 : vector<1x30xi1> to vector<1x30xi1>
    %33 = vector.broadcast %32 : vector<1x30xi1> to vector<16x30xi1>
    %34 = vector.shape_cast %29 : vector<16x1xf32> to vector<16x1xf32>
    %35 = vector.broadcast %34 : vector<16x1xf32> to vector<16x30xf32>
    %36 = vector.broadcast %cst_7 : f32 to vector<16x30xf32>
    %37 = arith.select %33, %35, %36 : vector<16x30xi1>, vector<16x30xf32>
    %38 = arith.addf %18, %37 : vector<16x30xf32>
    %c3_i32_8 = arith.constant 3 : i32
    %39 = vector.broadcast %c3_i32_8 : i32 to vector<1x120xi32>
    %40 = arith.cmpi sge, %16, %39 : vector<1x120xi32>
    %c8_i32 = arith.constant 8 : i32
    %41 = vector.broadcast %c8_i32 : i32 to vector<1x120xi32>
    %42 = arith.cmpi slt, %16, %41 : vector<1x120xi32>
    %43 = arith.andi %40, %42 : vector<1x120xi1>
    %cst_9 = arith.constant -3.40282347E+38 : f32
    %44 = vector.shape_cast %43 : vector<1x120xi1> to vector<1x120xi1>
    %45 = vector.broadcast %44 : vector<1x120xi1> to vector<16x120xi1>
    %46 = vector.broadcast %cst_9 : f32 to vector<16x120xf32>
    %47 = arith.select %45, %3, %46 : vector<16x120xi1>, vector<16x120xf32>
    %cst_10 = arith.constant dense<0xFF800000> : vector<16xf32>
    %48 = vector.multi_reduction <maximumf>, %47, %cst_10 [1] : vector<16x120xf32> to vector<16xf32>
    %49 = vector.shape_cast %48 : vector<16xf32> to vector<16x1xf32>
    %c1_i32 = arith.constant 1 : i32
    %50 = vector.broadcast %c1_i32 : i32 to vector<1x30xi32>
    %51 = arith.cmpi eq, %17, %50 : vector<1x30xi32>
    %cst_11 = arith.constant 0.000000e+00 : f32
    %52 = vector.shape_cast %51 : vector<1x30xi1> to vector<1x30xi1>
    %53 = vector.broadcast %52 : vector<1x30xi1> to vector<16x30xi1>
    %54 = vector.shape_cast %49 : vector<16x1xf32> to vector<16x1xf32>
    %55 = vector.broadcast %54 : vector<16x1xf32> to vector<16x30xf32>
    %56 = vector.broadcast %cst_11 : f32 to vector<16x30xf32>
    %57 = arith.select %53, %55, %56 : vector<16x30xi1>, vector<16x30xf32>
    %58 = arith.addf %38, %57 : vector<16x30xf32>
    %c8_i32_12 = arith.constant 8 : i32
    %59 = vector.broadcast %c8_i32_12 : i32 to vector<1x120xi32>
    %60 = arith.cmpi sge, %16, %59 : vector<1x120xi32>
    %c12_i32 = arith.constant 12 : i32
    %61 = vector.broadcast %c12_i32 : i32 to vector<1x120xi32>
    %62 = arith.cmpi slt, %16, %61 : vector<1x120xi32>
    %63 = arith.andi %60, %62 : vector<1x120xi1>
    %cst_13 = arith.constant -3.40282347E+38 : f32
    %64 = vector.shape_cast %63 : vector<1x120xi1> to vector<1x120xi1>
    %65 = vector.broadcast %64 : vector<1x120xi1> to vector<16x120xi1>
    %66 = vector.broadcast %cst_13 : f32 to vector<16x120xf32>
    %67 = arith.select %65, %3, %66 : vector<16x120xi1>, vector<16x120xf32>
    %cst_14 = arith.constant dense<0xFF800000> : vector<16xf32>
    %68 = vector.multi_reduction <maximumf>, %67, %cst_14 [1] : vector<16x120xf32> to vector<16xf32>
    %69 = vector.shape_cast %68 : vector<16xf32> to vector<16x1xf32>
    %c2_i32_15 = arith.constant 2 : i32
    %70 = vector.broadcast %c2_i32_15 : i32 to vector<1x30xi32>
    %71 = arith.cmpi eq, %17, %70 : vector<1x30xi32>
    %cst_16 = arith.constant 0.000000e+00 : f32
    %72 = vector.shape_cast %71 : vector<1x30xi1> to vector<1x30xi1>
    %73 = vector.broadcast %72 : vector<1x30xi1> to vector<16x30xi1>
    %74 = vector.shape_cast %69 : vector<16x1xf32> to vector<16x1xf32>
    %75 = vector.broadcast %74 : vector<16x1xf32> to vector<16x30xf32>
    %76 = vector.broadcast %cst_16 : f32 to vector<16x30xf32>
    %77 = arith.select %73, %75, %76 : vector<16x30xi1>, vector<16x30xf32>
    %78 = arith.addf %58, %77 : vector<16x30xf32>
    %c12_i32_17 = arith.constant 12 : i32
    %79 = vector.broadcast %c12_i32_17 : i32 to vector<1x120xi32>
    %80 = arith.cmpi sge, %16, %79 : vector<1x120xi32>
    %c15_i32 = arith.constant 15 : i32
    %81 = vector.broadcast %c15_i32 : i32 to vector<1x120xi32>
    %82 = arith.cmpi slt, %16, %81 : vector<1x120xi32>
    %83 = arith.andi %80, %82 : vector<1x120xi1>
    %cst_18 = arith.constant -3.40282347E+38 : f32
    %84 = vector.shape_cast %83 : vector<1x120xi1> to vector<1x120xi1>
    %85 = vector.broadcast %84 : vector<1x120xi1> to vector<16x120xi1>
    %86 = vector.broadcast %cst_18 : f32 to vector<16x120xf32>
    %87 = arith.select %85, %3, %86 : vector<16x120xi1>, vector<16x120xf32>
    %cst_19 = arith.constant dense<0xFF800000> : vector<16xf32>
    %88 = vector.multi_reduction <maximumf>, %87, %cst_19 [1] : vector<16x120xf32> to vector<16xf32>
    %89 = vector.shape_cast %88 : vector<16xf32> to vector<16x1xf32>
    %c3_i32_20 = arith.constant 3 : i32
    %90 = vector.broadcast %c3_i32_20 : i32 to vector<1x30xi32>
    %91 = arith.cmpi eq, %17, %90 : vector<1x30xi32>
    %cst_21 = arith.constant 0.000000e+00 : f32
    %92 = vector.shape_cast %91 : vector<1x30xi1> to vector<1x30xi1>
    %93 = vector.broadcast %92 : vector<1x30xi1> to vector<16x30xi1>
    %94 = vector.shape_cast %89 : vector<16x1xf32> to vector<16x1xf32>
    %95 = vector.broadcast %94 : vector<16x1xf32> to vector<16x30xf32>
    %96 = vector.broadcast %cst_21 : f32 to vector<16x30xf32>
    %97 = arith.select %93, %95, %96 : vector<16x30xi1>, vector<16x30xf32>
    %98 = arith.addf %78, %97 : vector<16x30xf32>
    %c15_i32_22 = arith.constant 15 : i32
    %99 = vector.broadcast %c15_i32_22 : i32 to vector<1x120xi32>
    %100 = arith.cmpi sge, %16, %99 : vector<1x120xi32>
    %c20_i32 = arith.constant 20 : i32
    %101 = vector.broadcast %c20_i32 : i32 to vector<1x120xi32>
    %102 = arith.cmpi slt, %16, %101 : vector<1x120xi32>
    %103 = arith.andi %100, %102 : vector<1x120xi1>
    %cst_23 = arith.constant -3.40282347E+38 : f32
    %104 = vector.shape_cast %103 : vector<1x120xi1> to vector<1x120xi1>
    %105 = vector.broadcast %104 : vector<1x120xi1> to vector<16x120xi1>
    %106 = vector.broadcast %cst_23 : f32 to vector<16x120xf32>
    %107 = arith.select %105, %3, %106 : vector<16x120xi1>, vector<16x120xf32>
    %cst_24 = arith.constant dense<0xFF800000> : vector<16xf32>
    %108 = vector.multi_reduction <maximumf>, %107, %cst_24 [1] : vector<16x120xf32> to vector<16xf32>
    %109 = vector.shape_cast %108 : vector<16xf32> to vector<16x1xf32>
    %c4_i32 = arith.constant 4 : i32
    %110 = vector.broadcast %c4_i32 : i32 to vector<1x30xi32>
    %111 = arith.cmpi eq, %17, %110 : vector<1x30xi32>
    %cst_25 = arith.constant 0.000000e+00 : f32
    %112 = vector.shape_cast %111 : vector<1x30xi1> to vector<1x30xi1>
    %113 = vector.broadcast %112 : vector<1x30xi1> to vector<16x30xi1>
    %114 = vector.shape_cast %109 : vector<16x1xf32> to vector<16x1xf32>
    %115 = vector.broadcast %114 : vector<16x1xf32> to vector<16x30xf32>
    %116 = vector.broadcast %cst_25 : f32 to vector<16x30xf32>
    %117 = arith.select %113, %115, %116 : vector<16x30xi1>, vector<16x30xf32>
    %118 = arith.addf %98, %117 : vector<16x30xf32>
    %c20_i32_26 = arith.constant 20 : i32
    %119 = vector.broadcast %c20_i32_26 : i32 to vector<1x120xi32>
    %120 = arith.cmpi sge, %16, %119 : vector<1x120xi32>
    %c24_i32 = arith.constant 24 : i32
    %121 = vector.broadcast %c24_i32 : i32 to vector<1x120xi32>
    %122 = arith.cmpi slt, %16, %121 : vector<1x120xi32>
    %123 = arith.andi %120, %122 : vector<1x120xi1>
    %cst_27 = arith.constant -3.40282347E+38 : f32
    %124 = vector.shape_cast %123 : vector<1x120xi1> to vector<1x120xi1>
    %125 = vector.broadcast %124 : vector<1x120xi1> to vector<16x120xi1>
    %126 = vector.broadcast %cst_27 : f32 to vector<16x120xf32>
    %127 = arith.select %125, %3, %126 : vector<16x120xi1>, vector<16x120xf32>
    %cst_28 = arith.constant dense<0xFF800000> : vector<16xf32>
    %128 = vector.multi_reduction <maximumf>, %127, %cst_28 [1] : vector<16x120xf32> to vector<16xf32>
    %129 = vector.shape_cast %128 : vector<16xf32> to vector<16x1xf32>
    %c5_i32 = arith.constant 5 : i32
    %130 = vector.broadcast %c5_i32 : i32 to vector<1x30xi32>
    %131 = arith.cmpi eq, %17, %130 : vector<1x30xi32>
    %cst_29 = arith.constant 0.000000e+00 : f32
    %132 = vector.shape_cast %131 : vector<1x30xi1> to vector<1x30xi1>
    %133 = vector.broadcast %132 : vector<1x30xi1> to vector<16x30xi1>
    %134 = vector.shape_cast %129 : vector<16x1xf32> to vector<16x1xf32>
    %135 = vector.broadcast %134 : vector<16x1xf32> to vector<16x30xf32>
    %136 = vector.broadcast %cst_29 : f32 to vector<16x30xf32>
    %137 = arith.select %133, %135, %136 : vector<16x30xi1>, vector<16x30xf32>
    %138 = arith.addf %118, %137 : vector<16x30xf32>
    %c24_i32_30 = arith.constant 24 : i32
    %139 = vector.broadcast %c24_i32_30 : i32 to vector<1x120xi32>
    %140 = arith.cmpi sge, %16, %139 : vector<1x120xi32>
    %c27_i32 = arith.constant 27 : i32
    %141 = vector.broadcast %c27_i32 : i32 to vector<1x120xi32>
    %142 = arith.cmpi slt, %16, %141 : vector<1x120xi32>
    %143 = arith.andi %140, %142 : vector<1x120xi1>
    %cst_31 = arith.constant -3.40282347E+38 : f32
    %144 = vector.shape_cast %143 : vector<1x120xi1> to vector<1x120xi1>
    %145 = vector.broadcast %144 : vector<1x120xi1> to vector<16x120xi1>
    %146 = vector.broadcast %cst_31 : f32 to vector<16x120xf32>
    %147 = arith.select %145, %3, %146 : vector<16x120xi1>, vector<16x120xf32>
    %cst_32 = arith.constant dense<0xFF800000> : vector<16xf32>
    %148 = vector.multi_reduction <maximumf>, %147, %cst_32 [1] : vector<16x120xf32> to vector<16xf32>
    %149 = vector.shape_cast %148 : vector<16xf32> to vector<16x1xf32>
    %c6_i32 = arith.constant 6 : i32
    %150 = vector.broadcast %c6_i32 : i32 to vector<1x30xi32>
    %151 = arith.cmpi eq, %17, %150 : vector<1x30xi32>
    %cst_33 = arith.constant 0.000000e+00 : f32
    %152 = vector.shape_cast %151 : vector<1x30xi1> to vector<1x30xi1>
    %153 = vector.broadcast %152 : vector<1x30xi1> to vector<16x30xi1>
    %154 = vector.shape_cast %149 : vector<16x1xf32> to vector<16x1xf32>
    %155 = vector.broadcast %154 : vector<16x1xf32> to vector<16x30xf32>
    %156 = vector.broadcast %cst_33 : f32 to vector<16x30xf32>
    %157 = arith.select %153, %155, %156 : vector<16x30xi1>, vector<16x30xf32>
    %158 = arith.addf %138, %157 : vector<16x30xf32>
    %c27_i32_34 = arith.constant 27 : i32
    %159 = vector.broadcast %c27_i32_34 : i32 to vector<1x120xi32>
    %160 = arith.cmpi sge, %16, %159 : vector<1x120xi32>
    %c32_i32 = arith.constant 32 : i32
    %161 = vector.broadcast %c32_i32 : i32 to vector<1x120xi32>
    %162 = arith.cmpi slt, %16, %161 : vector<1x120xi32>
    %163 = arith.andi %160, %162 : vector<1x120xi1>
    %cst_35 = arith.constant -3.40282347E+38 : f32
    %164 = vector.shape_cast %163 : vector<1x120xi1> to vector<1x120xi1>
    %165 = vector.broadcast %164 : vector<1x120xi1> to vector<16x120xi1>
    %166 = vector.broadcast %cst_35 : f32 to vector<16x120xf32>
    %167 = arith.select %165, %3, %166 : vector<16x120xi1>, vector<16x120xf32>
    %cst_36 = arith.constant dense<0xFF800000> : vector<16xf32>
    %168 = vector.multi_reduction <maximumf>, %167, %cst_36 [1] : vector<16x120xf32> to vector<16xf32>
    %169 = vector.shape_cast %168 : vector<16xf32> to vector<16x1xf32>
    %c7_i32 = arith.constant 7 : i32
    %170 = vector.broadcast %c7_i32 : i32 to vector<1x30xi32>
    %171 = arith.cmpi eq, %17, %170 : vector<1x30xi32>
    %cst_37 = arith.constant 0.000000e+00 : f32
    %172 = vector.shape_cast %171 : vector<1x30xi1> to vector<1x30xi1>
    %173 = vector.broadcast %172 : vector<1x30xi1> to vector<16x30xi1>
    %174 = vector.shape_cast %169 : vector<16x1xf32> to vector<16x1xf32>
    %175 = vector.broadcast %174 : vector<16x1xf32> to vector<16x30xf32>
    %176 = vector.broadcast %cst_37 : f32 to vector<16x30xf32>
    %177 = arith.select %173, %175, %176 : vector<16x30xi1>, vector<16x30xf32>
    %178 = arith.addf %158, %177 : vector<16x30xf32>
    %c32_i32_38 = arith.constant 32 : i32
    %179 = vector.broadcast %c32_i32_38 : i32 to vector<1x120xi32>
    %180 = arith.cmpi sge, %16, %179 : vector<1x120xi32>
    %c36_i32 = arith.constant 36 : i32
    %181 = vector.broadcast %c36_i32 : i32 to vector<1x120xi32>
    %182 = arith.cmpi slt, %16, %181 : vector<1x120xi32>
    %183 = arith.andi %180, %182 : vector<1x120xi1>
    %cst_39 = arith.constant -3.40282347E+38 : f32
    %184 = vector.shape_cast %183 : vector<1x120xi1> to vector<1x120xi1>
    %185 = vector.broadcast %184 : vector<1x120xi1> to vector<16x120xi1>
    %186 = vector.broadcast %cst_39 : f32 to vector<16x120xf32>
    %187 = arith.select %185, %3, %186 : vector<16x120xi1>, vector<16x120xf32>
    %cst_40 = arith.constant dense<0xFF800000> : vector<16xf32>
    %188 = vector.multi_reduction <maximumf>, %187, %cst_40 [1] : vector<16x120xf32> to vector<16xf32>
    %189 = vector.shape_cast %188 : vector<16xf32> to vector<16x1xf32>
    %c8_i32_41 = arith.constant 8 : i32
    %190 = vector.broadcast %c8_i32_41 : i32 to vector<1x30xi32>
    %191 = arith.cmpi eq, %17, %190 : vector<1x30xi32>
    %cst_42 = arith.constant 0.000000e+00 : f32
    %192 = vector.shape_cast %191 : vector<1x30xi1> to vector<1x30xi1>
    %193 = vector.broadcast %192 : vector<1x30xi1> to vector<16x30xi1>
    %194 = vector.shape_cast %189 : vector<16x1xf32> to vector<16x1xf32>
    %195 = vector.broadcast %194 : vector<16x1xf32> to vector<16x30xf32>
    %196 = vector.broadcast %cst_42 : f32 to vector<16x30xf32>
    %197 = arith.select %193, %195, %196 : vector<16x30xi1>, vector<16x30xf32>
    %198 = arith.addf %178, %197 : vector<16x30xf32>
    %c36_i32_43 = arith.constant 36 : i32
    %199 = vector.broadcast %c36_i32_43 : i32 to vector<1x120xi32>
    %200 = arith.cmpi sge, %16, %199 : vector<1x120xi32>
    %c39_i32 = arith.constant 39 : i32
    %201 = vector.broadcast %c39_i32 : i32 to vector<1x120xi32>
    %202 = arith.cmpi slt, %16, %201 : vector<1x120xi32>
    %203 = arith.andi %200, %202 : vector<1x120xi1>
    %cst_44 = arith.constant -3.40282347E+38 : f32
    %204 = vector.shape_cast %203 : vector<1x120xi1> to vector<1x120xi1>
    %205 = vector.broadcast %204 : vector<1x120xi1> to vector<16x120xi1>
    %206 = vector.broadcast %cst_44 : f32 to vector<16x120xf32>
    %207 = arith.select %205, %3, %206 : vector<16x120xi1>, vector<16x120xf32>
    %cst_45 = arith.constant dense<0xFF800000> : vector<16xf32>
    %208 = vector.multi_reduction <maximumf>, %207, %cst_45 [1] : vector<16x120xf32> to vector<16xf32>
    %209 = vector.shape_cast %208 : vector<16xf32> to vector<16x1xf32>
    %c9_i32 = arith.constant 9 : i32
    %210 = vector.broadcast %c9_i32 : i32 to vector<1x30xi32>
    %211 = arith.cmpi eq, %17, %210 : vector<1x30xi32>
    %cst_46 = arith.constant 0.000000e+00 : f32
    %212 = vector.shape_cast %211 : vector<1x30xi1> to vector<1x30xi1>
    %213 = vector.broadcast %212 : vector<1x30xi1> to vector<16x30xi1>
    %214 = vector.shape_cast %209 : vector<16x1xf32> to vector<16x1xf32>
    %215 = vector.broadcast %214 : vector<16x1xf32> to vector<16x30xf32>
    %216 = vector.broadcast %cst_46 : f32 to vector<16x30xf32>
    %217 = arith.select %213, %215, %216 : vector<16x30xi1>, vector<16x30xf32>
    %218 = arith.addf %198, %217 : vector<16x30xf32>
    %c39_i32_47 = arith.constant 39 : i32
    %219 = vector.broadcast %c39_i32_47 : i32 to vector<1x120xi32>
    %220 = arith.cmpi sge, %16, %219 : vector<1x120xi32>
    %c44_i32 = arith.constant 44 : i32
    %221 = vector.broadcast %c44_i32 : i32 to vector<1x120xi32>
    %222 = arith.cmpi slt, %16, %221 : vector<1x120xi32>
    %223 = arith.andi %220, %222 : vector<1x120xi1>
    %cst_48 = arith.constant -3.40282347E+38 : f32
    %224 = vector.shape_cast %223 : vector<1x120xi1> to vector<1x120xi1>
    %225 = vector.broadcast %224 : vector<1x120xi1> to vector<16x120xi1>
    %226 = vector.broadcast %cst_48 : f32 to vector<16x120xf32>
    %227 = arith.select %225, %3, %226 : vector<16x120xi1>, vector<16x120xf32>
    %cst_49 = arith.constant dense<0xFF800000> : vector<16xf32>
    %228 = vector.multi_reduction <maximumf>, %227, %cst_49 [1] : vector<16x120xf32> to vector<16xf32>
    %229 = vector.shape_cast %228 : vector<16xf32> to vector<16x1xf32>
    %c10_i32 = arith.constant 10 : i32
    %230 = vector.broadcast %c10_i32 : i32 to vector<1x30xi32>
    %231 = arith.cmpi eq, %17, %230 : vector<1x30xi32>
    %cst_50 = arith.constant 0.000000e+00 : f32
    %232 = vector.shape_cast %231 : vector<1x30xi1> to vector<1x30xi1>
    %233 = vector.broadcast %232 : vector<1x30xi1> to vector<16x30xi1>
    %234 = vector.shape_cast %229 : vector<16x1xf32> to vector<16x1xf32>
    %235 = vector.broadcast %234 : vector<16x1xf32> to vector<16x30xf32>
    %236 = vector.broadcast %cst_50 : f32 to vector<16x30xf32>
    %237 = arith.select %233, %235, %236 : vector<16x30xi1>, vector<16x30xf32>
    %238 = arith.addf %218, %237 : vector<16x30xf32>
    %c44_i32_51 = arith.constant 44 : i32
    %239 = vector.broadcast %c44_i32_51 : i32 to vector<1x120xi32>
    %240 = arith.cmpi sge, %16, %239 : vector<1x120xi32>
    %c48_i32 = arith.constant 48 : i32
    %241 = vector.broadcast %c48_i32 : i32 to vector<1x120xi32>
    %242 = arith.cmpi slt, %16, %241 : vector<1x120xi32>
    %243 = arith.andi %240, %242 : vector<1x120xi1>
    %cst_52 = arith.constant -3.40282347E+38 : f32
    %244 = vector.shape_cast %243 : vector<1x120xi1> to vector<1x120xi1>
    %245 = vector.broadcast %244 : vector<1x120xi1> to vector<16x120xi1>
    %246 = vector.broadcast %cst_52 : f32 to vector<16x120xf32>
    %247 = arith.select %245, %3, %246 : vector<16x120xi1>, vector<16x120xf32>
    %cst_53 = arith.constant dense<0xFF800000> : vector<16xf32>
    %248 = vector.multi_reduction <maximumf>, %247, %cst_53 [1] : vector<16x120xf32> to vector<16xf32>
    %249 = vector.shape_cast %248 : vector<16xf32> to vector<16x1xf32>
    %c11_i32 = arith.constant 11 : i32
    %250 = vector.broadcast %c11_i32 : i32 to vector<1x30xi32>
    %251 = arith.cmpi eq, %17, %250 : vector<1x30xi32>
    %cst_54 = arith.constant 0.000000e+00 : f32
    %252 = vector.shape_cast %251 : vector<1x30xi1> to vector<1x30xi1>
    %253 = vector.broadcast %252 : vector<1x30xi1> to vector<16x30xi1>
    %254 = vector.shape_cast %249 : vector<16x1xf32> to vector<16x1xf32>
    %255 = vector.broadcast %254 : vector<16x1xf32> to vector<16x30xf32>
    %256 = vector.broadcast %cst_54 : f32 to vector<16x30xf32>
    %257 = arith.select %253, %255, %256 : vector<16x30xi1>, vector<16x30xf32>
    %258 = arith.addf %238, %257 : vector<16x30xf32>
    %c48_i32_55 = arith.constant 48 : i32
    %259 = vector.broadcast %c48_i32_55 : i32 to vector<1x120xi32>
    %260 = arith.cmpi sge, %16, %259 : vector<1x120xi32>
    %c51_i32 = arith.constant 51 : i32
    %261 = vector.broadcast %c51_i32 : i32 to vector<1x120xi32>
    %262 = arith.cmpi slt, %16, %261 : vector<1x120xi32>
    %263 = arith.andi %260, %262 : vector<1x120xi1>
    %cst_56 = arith.constant -3.40282347E+38 : f32
    %264 = vector.shape_cast %263 : vector<1x120xi1> to vector<1x120xi1>
    %265 = vector.broadcast %264 : vector<1x120xi1> to vector<16x120xi1>
    %266 = vector.broadcast %cst_56 : f32 to vector<16x120xf32>
    %267 = arith.select %265, %3, %266 : vector<16x120xi1>, vector<16x120xf32>
    %cst_57 = arith.constant dense<0xFF800000> : vector<16xf32>
    %268 = vector.multi_reduction <maximumf>, %267, %cst_57 [1] : vector<16x120xf32> to vector<16xf32>
    %269 = vector.shape_cast %268 : vector<16xf32> to vector<16x1xf32>
    %c12_i32_58 = arith.constant 12 : i32
    %270 = vector.broadcast %c12_i32_58 : i32 to vector<1x30xi32>
    %271 = arith.cmpi eq, %17, %270 : vector<1x30xi32>
    %cst_59 = arith.constant 0.000000e+00 : f32
    %272 = vector.shape_cast %271 : vector<1x30xi1> to vector<1x30xi1>
    %273 = vector.broadcast %272 : vector<1x30xi1> to vector<16x30xi1>
    %274 = vector.shape_cast %269 : vector<16x1xf32> to vector<16x1xf32>
    %275 = vector.broadcast %274 : vector<16x1xf32> to vector<16x30xf32>
    %276 = vector.broadcast %cst_59 : f32 to vector<16x30xf32>
    %277 = arith.select %273, %275, %276 : vector<16x30xi1>, vector<16x30xf32>
    %278 = arith.addf %258, %277 : vector<16x30xf32>
    %c51_i32_60 = arith.constant 51 : i32
    %279 = vector.broadcast %c51_i32_60 : i32 to vector<1x120xi32>
    %280 = arith.cmpi sge, %16, %279 : vector<1x120xi32>
    %c56_i32 = arith.constant 56 : i32
    %281 = vector.broadcast %c56_i32 : i32 to vector<1x120xi32>
    %282 = arith.cmpi slt, %16, %281 : vector<1x120xi32>
    %283 = arith.andi %280, %282 : vector<1x120xi1>
    %cst_61 = arith.constant -3.40282347E+38 : f32
    %284 = vector.shape_cast %283 : vector<1x120xi1> to vector<1x120xi1>
    %285 = vector.broadcast %284 : vector<1x120xi1> to vector<16x120xi1>
    %286 = vector.broadcast %cst_61 : f32 to vector<16x120xf32>
    %287 = arith.select %285, %3, %286 : vector<16x120xi1>, vector<16x120xf32>
    %cst_62 = arith.constant dense<0xFF800000> : vector<16xf32>
    %288 = vector.multi_reduction <maximumf>, %287, %cst_62 [1] : vector<16x120xf32> to vector<16xf32>
    %289 = vector.shape_cast %288 : vector<16xf32> to vector<16x1xf32>
    %c13_i32 = arith.constant 13 : i32
    %290 = vector.broadcast %c13_i32 : i32 to vector<1x30xi32>
    %291 = arith.cmpi eq, %17, %290 : vector<1x30xi32>
    %cst_63 = arith.constant 0.000000e+00 : f32
    %292 = vector.shape_cast %291 : vector<1x30xi1> to vector<1x30xi1>
    %293 = vector.broadcast %292 : vector<1x30xi1> to vector<16x30xi1>
    %294 = vector.shape_cast %289 : vector<16x1xf32> to vector<16x1xf32>
    %295 = vector.broadcast %294 : vector<16x1xf32> to vector<16x30xf32>
    %296 = vector.broadcast %cst_63 : f32 to vector<16x30xf32>
    %297 = arith.select %293, %295, %296 : vector<16x30xi1>, vector<16x30xf32>
    %298 = arith.addf %278, %297 : vector<16x30xf32>
    %c56_i32_64 = arith.constant 56 : i32
    %299 = vector.broadcast %c56_i32_64 : i32 to vector<1x120xi32>
    %300 = arith.cmpi sge, %16, %299 : vector<1x120xi32>
    %c60_i32 = arith.constant 60 : i32
    %301 = vector.broadcast %c60_i32 : i32 to vector<1x120xi32>
    %302 = arith.cmpi slt, %16, %301 : vector<1x120xi32>
    %303 = arith.andi %300, %302 : vector<1x120xi1>
    %cst_65 = arith.constant -3.40282347E+38 : f32
    %304 = vector.shape_cast %303 : vector<1x120xi1> to vector<1x120xi1>
    %305 = vector.broadcast %304 : vector<1x120xi1> to vector<16x120xi1>
    %306 = vector.broadcast %cst_65 : f32 to vector<16x120xf32>
    %307 = arith.select %305, %3, %306 : vector<16x120xi1>, vector<16x120xf32>
    %cst_66 = arith.constant dense<0xFF800000> : vector<16xf32>
    %308 = vector.multi_reduction <maximumf>, %307, %cst_66 [1] : vector<16x120xf32> to vector<16xf32>
    %309 = vector.shape_cast %308 : vector<16xf32> to vector<16x1xf32>
    %c14_i32 = arith.constant 14 : i32
    %310 = vector.broadcast %c14_i32 : i32 to vector<1x30xi32>
    %311 = arith.cmpi eq, %17, %310 : vector<1x30xi32>
    %cst_67 = arith.constant 0.000000e+00 : f32
    %312 = vector.shape_cast %311 : vector<1x30xi1> to vector<1x30xi1>
    %313 = vector.broadcast %312 : vector<1x30xi1> to vector<16x30xi1>
    %314 = vector.shape_cast %309 : vector<16x1xf32> to vector<16x1xf32>
    %315 = vector.broadcast %314 : vector<16x1xf32> to vector<16x30xf32>
    %316 = vector.broadcast %cst_67 : f32 to vector<16x30xf32>
    %317 = arith.select %313, %315, %316 : vector<16x30xi1>, vector<16x30xf32>
    %318 = arith.addf %298, %317 : vector<16x30xf32>
    %c60_i32_68 = arith.constant 60 : i32
    %319 = vector.broadcast %c60_i32_68 : i32 to vector<1x120xi32>
    %320 = arith.cmpi sge, %16, %319 : vector<1x120xi32>
    %c63_i32 = arith.constant 63 : i32
    %321 = vector.broadcast %c63_i32 : i32 to vector<1x120xi32>
    %322 = arith.cmpi slt, %16, %321 : vector<1x120xi32>
    %323 = arith.andi %320, %322 : vector<1x120xi1>
    %cst_69 = arith.constant -3.40282347E+38 : f32
    %324 = vector.shape_cast %323 : vector<1x120xi1> to vector<1x120xi1>
    %325 = vector.broadcast %324 : vector<1x120xi1> to vector<16x120xi1>
    %326 = vector.broadcast %cst_69 : f32 to vector<16x120xf32>
    %327 = arith.select %325, %3, %326 : vector<16x120xi1>, vector<16x120xf32>
    %cst_70 = arith.constant dense<0xFF800000> : vector<16xf32>
    %328 = vector.multi_reduction <maximumf>, %327, %cst_70 [1] : vector<16x120xf32> to vector<16xf32>
    %329 = vector.shape_cast %328 : vector<16xf32> to vector<16x1xf32>
    %c15_i32_71 = arith.constant 15 : i32
    %330 = vector.broadcast %c15_i32_71 : i32 to vector<1x30xi32>
    %331 = arith.cmpi eq, %17, %330 : vector<1x30xi32>
    %cst_72 = arith.constant 0.000000e+00 : f32
    %332 = vector.shape_cast %331 : vector<1x30xi1> to vector<1x30xi1>
    %333 = vector.broadcast %332 : vector<1x30xi1> to vector<16x30xi1>
    %334 = vector.shape_cast %329 : vector<16x1xf32> to vector<16x1xf32>
    %335 = vector.broadcast %334 : vector<16x1xf32> to vector<16x30xf32>
    %336 = vector.broadcast %cst_72 : f32 to vector<16x30xf32>
    %337 = arith.select %333, %335, %336 : vector<16x30xi1>, vector<16x30xf32>
    %338 = arith.addf %318, %337 : vector<16x30xf32>
    %c63_i32_73 = arith.constant 63 : i32
    %339 = vector.broadcast %c63_i32_73 : i32 to vector<1x120xi32>
    %340 = arith.cmpi sge, %16, %339 : vector<1x120xi32>
    %c68_i32 = arith.constant 68 : i32
    %341 = vector.broadcast %c68_i32 : i32 to vector<1x120xi32>
    %342 = arith.cmpi slt, %16, %341 : vector<1x120xi32>
    %343 = arith.andi %340, %342 : vector<1x120xi1>
    %cst_74 = arith.constant -3.40282347E+38 : f32
    %344 = vector.shape_cast %343 : vector<1x120xi1> to vector<1x120xi1>
    %345 = vector.broadcast %344 : vector<1x120xi1> to vector<16x120xi1>
    %346 = vector.broadcast %cst_74 : f32 to vector<16x120xf32>
    %347 = arith.select %345, %3, %346 : vector<16x120xi1>, vector<16x120xf32>
    %cst_75 = arith.constant dense<0xFF800000> : vector<16xf32>
    %348 = vector.multi_reduction <maximumf>, %347, %cst_75 [1] : vector<16x120xf32> to vector<16xf32>
    %349 = vector.shape_cast %348 : vector<16xf32> to vector<16x1xf32>
    %c16_i32_76 = arith.constant 16 : i32
    %350 = vector.broadcast %c16_i32_76 : i32 to vector<1x30xi32>
    %351 = arith.cmpi eq, %17, %350 : vector<1x30xi32>
    %cst_77 = arith.constant 0.000000e+00 : f32
    %352 = vector.shape_cast %351 : vector<1x30xi1> to vector<1x30xi1>
    %353 = vector.broadcast %352 : vector<1x30xi1> to vector<16x30xi1>
    %354 = vector.shape_cast %349 : vector<16x1xf32> to vector<16x1xf32>
    %355 = vector.broadcast %354 : vector<16x1xf32> to vector<16x30xf32>
    %356 = vector.broadcast %cst_77 : f32 to vector<16x30xf32>
    %357 = arith.select %353, %355, %356 : vector<16x30xi1>, vector<16x30xf32>
    %358 = arith.addf %338, %357 : vector<16x30xf32>
    %c68_i32_78 = arith.constant 68 : i32
    %359 = vector.broadcast %c68_i32_78 : i32 to vector<1x120xi32>
    %360 = arith.cmpi sge, %16, %359 : vector<1x120xi32>
    %c72_i32 = arith.constant 72 : i32
    %361 = vector.broadcast %c72_i32 : i32 to vector<1x120xi32>
    %362 = arith.cmpi slt, %16, %361 : vector<1x120xi32>
    %363 = arith.andi %360, %362 : vector<1x120xi1>
    %cst_79 = arith.constant -3.40282347E+38 : f32
    %364 = vector.shape_cast %363 : vector<1x120xi1> to vector<1x120xi1>
    %365 = vector.broadcast %364 : vector<1x120xi1> to vector<16x120xi1>
    %366 = vector.broadcast %cst_79 : f32 to vector<16x120xf32>
    %367 = arith.select %365, %3, %366 : vector<16x120xi1>, vector<16x120xf32>
    %cst_80 = arith.constant dense<0xFF800000> : vector<16xf32>
    %368 = vector.multi_reduction <maximumf>, %367, %cst_80 [1] : vector<16x120xf32> to vector<16xf32>
    %369 = vector.shape_cast %368 : vector<16xf32> to vector<16x1xf32>
    %c17_i32 = arith.constant 17 : i32
    %370 = vector.broadcast %c17_i32 : i32 to vector<1x30xi32>
    %371 = arith.cmpi eq, %17, %370 : vector<1x30xi32>
    %cst_81 = arith.constant 0.000000e+00 : f32
    %372 = vector.shape_cast %371 : vector<1x30xi1> to vector<1x30xi1>
    %373 = vector.broadcast %372 : vector<1x30xi1> to vector<16x30xi1>
    %374 = vector.shape_cast %369 : vector<16x1xf32> to vector<16x1xf32>
    %375 = vector.broadcast %374 : vector<16x1xf32> to vector<16x30xf32>
    %376 = vector.broadcast %cst_81 : f32 to vector<16x30xf32>
    %377 = arith.select %373, %375, %376 : vector<16x30xi1>, vector<16x30xf32>
    %378 = arith.addf %358, %377 : vector<16x30xf32>
    %c72_i32_82 = arith.constant 72 : i32
    %379 = vector.broadcast %c72_i32_82 : i32 to vector<1x120xi32>
    %380 = arith.cmpi sge, %16, %379 : vector<1x120xi32>
    %c75_i32 = arith.constant 75 : i32
    %381 = vector.broadcast %c75_i32 : i32 to vector<1x120xi32>
    %382 = arith.cmpi slt, %16, %381 : vector<1x120xi32>
    %383 = arith.andi %380, %382 : vector<1x120xi1>
    %cst_83 = arith.constant -3.40282347E+38 : f32
    %384 = vector.shape_cast %383 : vector<1x120xi1> to vector<1x120xi1>
    %385 = vector.broadcast %384 : vector<1x120xi1> to vector<16x120xi1>
    %386 = vector.broadcast %cst_83 : f32 to vector<16x120xf32>
    %387 = arith.select %385, %3, %386 : vector<16x120xi1>, vector<16x120xf32>
    %cst_84 = arith.constant dense<0xFF800000> : vector<16xf32>
    %388 = vector.multi_reduction <maximumf>, %387, %cst_84 [1] : vector<16x120xf32> to vector<16xf32>
    %389 = vector.shape_cast %388 : vector<16xf32> to vector<16x1xf32>
    %c18_i32 = arith.constant 18 : i32
    %390 = vector.broadcast %c18_i32 : i32 to vector<1x30xi32>
    %391 = arith.cmpi eq, %17, %390 : vector<1x30xi32>
    %cst_85 = arith.constant 0.000000e+00 : f32
    %392 = vector.shape_cast %391 : vector<1x30xi1> to vector<1x30xi1>
    %393 = vector.broadcast %392 : vector<1x30xi1> to vector<16x30xi1>
    %394 = vector.shape_cast %389 : vector<16x1xf32> to vector<16x1xf32>
    %395 = vector.broadcast %394 : vector<16x1xf32> to vector<16x30xf32>
    %396 = vector.broadcast %cst_85 : f32 to vector<16x30xf32>
    %397 = arith.select %393, %395, %396 : vector<16x30xi1>, vector<16x30xf32>
    %398 = arith.addf %378, %397 : vector<16x30xf32>
    %c75_i32_86 = arith.constant 75 : i32
    %399 = vector.broadcast %c75_i32_86 : i32 to vector<1x120xi32>
    %400 = arith.cmpi sge, %16, %399 : vector<1x120xi32>
    %c80_i32 = arith.constant 80 : i32
    %401 = vector.broadcast %c80_i32 : i32 to vector<1x120xi32>
    %402 = arith.cmpi slt, %16, %401 : vector<1x120xi32>
    %403 = arith.andi %400, %402 : vector<1x120xi1>
    %cst_87 = arith.constant -3.40282347E+38 : f32
    %404 = vector.shape_cast %403 : vector<1x120xi1> to vector<1x120xi1>
    %405 = vector.broadcast %404 : vector<1x120xi1> to vector<16x120xi1>
    %406 = vector.broadcast %cst_87 : f32 to vector<16x120xf32>
    %407 = arith.select %405, %3, %406 : vector<16x120xi1>, vector<16x120xf32>
    %cst_88 = arith.constant dense<0xFF800000> : vector<16xf32>
    %408 = vector.multi_reduction <maximumf>, %407, %cst_88 [1] : vector<16x120xf32> to vector<16xf32>
    %409 = vector.shape_cast %408 : vector<16xf32> to vector<16x1xf32>
    %c19_i32 = arith.constant 19 : i32
    %410 = vector.broadcast %c19_i32 : i32 to vector<1x30xi32>
    %411 = arith.cmpi eq, %17, %410 : vector<1x30xi32>
    %cst_89 = arith.constant 0.000000e+00 : f32
    %412 = vector.shape_cast %411 : vector<1x30xi1> to vector<1x30xi1>
    %413 = vector.broadcast %412 : vector<1x30xi1> to vector<16x30xi1>
    %414 = vector.shape_cast %409 : vector<16x1xf32> to vector<16x1xf32>
    %415 = vector.broadcast %414 : vector<16x1xf32> to vector<16x30xf32>
    %416 = vector.broadcast %cst_89 : f32 to vector<16x30xf32>
    %417 = arith.select %413, %415, %416 : vector<16x30xi1>, vector<16x30xf32>
    %418 = arith.addf %398, %417 : vector<16x30xf32>
    %c80_i32_90 = arith.constant 80 : i32
    %419 = vector.broadcast %c80_i32_90 : i32 to vector<1x120xi32>
    %420 = arith.cmpi sge, %16, %419 : vector<1x120xi32>
    %c84_i32 = arith.constant 84 : i32
    %421 = vector.broadcast %c84_i32 : i32 to vector<1x120xi32>
    %422 = arith.cmpi slt, %16, %421 : vector<1x120xi32>
    %423 = arith.andi %420, %422 : vector<1x120xi1>
    %cst_91 = arith.constant -3.40282347E+38 : f32
    %424 = vector.shape_cast %423 : vector<1x120xi1> to vector<1x120xi1>
    %425 = vector.broadcast %424 : vector<1x120xi1> to vector<16x120xi1>
    %426 = vector.broadcast %cst_91 : f32 to vector<16x120xf32>
    %427 = arith.select %425, %3, %426 : vector<16x120xi1>, vector<16x120xf32>
    %cst_92 = arith.constant dense<0xFF800000> : vector<16xf32>
    %428 = vector.multi_reduction <maximumf>, %427, %cst_92 [1] : vector<16x120xf32> to vector<16xf32>
    %429 = vector.shape_cast %428 : vector<16xf32> to vector<16x1xf32>
    %c20_i32_93 = arith.constant 20 : i32
    %430 = vector.broadcast %c20_i32_93 : i32 to vector<1x30xi32>
    %431 = arith.cmpi eq, %17, %430 : vector<1x30xi32>
    %cst_94 = arith.constant 0.000000e+00 : f32
    %432 = vector.shape_cast %431 : vector<1x30xi1> to vector<1x30xi1>
    %433 = vector.broadcast %432 : vector<1x30xi1> to vector<16x30xi1>
    %434 = vector.shape_cast %429 : vector<16x1xf32> to vector<16x1xf32>
    %435 = vector.broadcast %434 : vector<16x1xf32> to vector<16x30xf32>
    %436 = vector.broadcast %cst_94 : f32 to vector<16x30xf32>
    %437 = arith.select %433, %435, %436 : vector<16x30xi1>, vector<16x30xf32>
    %438 = arith.addf %418, %437 : vector<16x30xf32>
    %c84_i32_95 = arith.constant 84 : i32
    %439 = vector.broadcast %c84_i32_95 : i32 to vector<1x120xi32>
    %440 = arith.cmpi sge, %16, %439 : vector<1x120xi32>
    %c87_i32 = arith.constant 87 : i32
    %441 = vector.broadcast %c87_i32 : i32 to vector<1x120xi32>
    %442 = arith.cmpi slt, %16, %441 : vector<1x120xi32>
    %443 = arith.andi %440, %442 : vector<1x120xi1>
    %cst_96 = arith.constant -3.40282347E+38 : f32
    %444 = vector.shape_cast %443 : vector<1x120xi1> to vector<1x120xi1>
    %445 = vector.broadcast %444 : vector<1x120xi1> to vector<16x120xi1>
    %446 = vector.broadcast %cst_96 : f32 to vector<16x120xf32>
    %447 = arith.select %445, %3, %446 : vector<16x120xi1>, vector<16x120xf32>
    %cst_97 = arith.constant dense<0xFF800000> : vector<16xf32>
    %448 = vector.multi_reduction <maximumf>, %447, %cst_97 [1] : vector<16x120xf32> to vector<16xf32>
    %449 = vector.shape_cast %448 : vector<16xf32> to vector<16x1xf32>
    %c21_i32 = arith.constant 21 : i32
    %450 = vector.broadcast %c21_i32 : i32 to vector<1x30xi32>
    %451 = arith.cmpi eq, %17, %450 : vector<1x30xi32>
    %cst_98 = arith.constant 0.000000e+00 : f32
    %452 = vector.shape_cast %451 : vector<1x30xi1> to vector<1x30xi1>
    %453 = vector.broadcast %452 : vector<1x30xi1> to vector<16x30xi1>
    %454 = vector.shape_cast %449 : vector<16x1xf32> to vector<16x1xf32>
    %455 = vector.broadcast %454 : vector<16x1xf32> to vector<16x30xf32>
    %456 = vector.broadcast %cst_98 : f32 to vector<16x30xf32>
    %457 = arith.select %453, %455, %456 : vector<16x30xi1>, vector<16x30xf32>
    %458 = arith.addf %438, %457 : vector<16x30xf32>
    %c87_i32_99 = arith.constant 87 : i32
    %459 = vector.broadcast %c87_i32_99 : i32 to vector<1x120xi32>
    %460 = arith.cmpi sge, %16, %459 : vector<1x120xi32>
    %c92_i32 = arith.constant 92 : i32
    %461 = vector.broadcast %c92_i32 : i32 to vector<1x120xi32>
    %462 = arith.cmpi slt, %16, %461 : vector<1x120xi32>
    %463 = arith.andi %460, %462 : vector<1x120xi1>
    %cst_100 = arith.constant -3.40282347E+38 : f32
    %464 = vector.shape_cast %463 : vector<1x120xi1> to vector<1x120xi1>
    %465 = vector.broadcast %464 : vector<1x120xi1> to vector<16x120xi1>
    %466 = vector.broadcast %cst_100 : f32 to vector<16x120xf32>
    %467 = arith.select %465, %3, %466 : vector<16x120xi1>, vector<16x120xf32>
    %cst_101 = arith.constant dense<0xFF800000> : vector<16xf32>
    %468 = vector.multi_reduction <maximumf>, %467, %cst_101 [1] : vector<16x120xf32> to vector<16xf32>
    %469 = vector.shape_cast %468 : vector<16xf32> to vector<16x1xf32>
    %c22_i32 = arith.constant 22 : i32
    %470 = vector.broadcast %c22_i32 : i32 to vector<1x30xi32>
    %471 = arith.cmpi eq, %17, %470 : vector<1x30xi32>
    %cst_102 = arith.constant 0.000000e+00 : f32
    %472 = vector.shape_cast %471 : vector<1x30xi1> to vector<1x30xi1>
    %473 = vector.broadcast %472 : vector<1x30xi1> to vector<16x30xi1>
    %474 = vector.shape_cast %469 : vector<16x1xf32> to vector<16x1xf32>
    %475 = vector.broadcast %474 : vector<16x1xf32> to vector<16x30xf32>
    %476 = vector.broadcast %cst_102 : f32 to vector<16x30xf32>
    %477 = arith.select %473, %475, %476 : vector<16x30xi1>, vector<16x30xf32>
    %478 = arith.addf %458, %477 : vector<16x30xf32>
    %c92_i32_103 = arith.constant 92 : i32
    %479 = vector.broadcast %c92_i32_103 : i32 to vector<1x120xi32>
    %480 = arith.cmpi sge, %16, %479 : vector<1x120xi32>
    %c96_i32 = arith.constant 96 : i32
    %481 = vector.broadcast %c96_i32 : i32 to vector<1x120xi32>
    %482 = arith.cmpi slt, %16, %481 : vector<1x120xi32>
    %483 = arith.andi %480, %482 : vector<1x120xi1>
    %cst_104 = arith.constant -3.40282347E+38 : f32
    %484 = vector.shape_cast %483 : vector<1x120xi1> to vector<1x120xi1>
    %485 = vector.broadcast %484 : vector<1x120xi1> to vector<16x120xi1>
    %486 = vector.broadcast %cst_104 : f32 to vector<16x120xf32>
    %487 = arith.select %485, %3, %486 : vector<16x120xi1>, vector<16x120xf32>
    %cst_105 = arith.constant dense<0xFF800000> : vector<16xf32>
    %488 = vector.multi_reduction <maximumf>, %487, %cst_105 [1] : vector<16x120xf32> to vector<16xf32>
    %489 = vector.shape_cast %488 : vector<16xf32> to vector<16x1xf32>
    %c23_i32 = arith.constant 23 : i32
    %490 = vector.broadcast %c23_i32 : i32 to vector<1x30xi32>
    %491 = arith.cmpi eq, %17, %490 : vector<1x30xi32>
    %cst_106 = arith.constant 0.000000e+00 : f32
    %492 = vector.shape_cast %491 : vector<1x30xi1> to vector<1x30xi1>
    %493 = vector.broadcast %492 : vector<1x30xi1> to vector<16x30xi1>
    %494 = vector.shape_cast %489 : vector<16x1xf32> to vector<16x1xf32>
    %495 = vector.broadcast %494 : vector<16x1xf32> to vector<16x30xf32>
    %496 = vector.broadcast %cst_106 : f32 to vector<16x30xf32>
    %497 = arith.select %493, %495, %496 : vector<16x30xi1>, vector<16x30xf32>
    %498 = arith.addf %478, %497 : vector<16x30xf32>
    %c96_i32_107 = arith.constant 96 : i32
    %499 = vector.broadcast %c96_i32_107 : i32 to vector<1x120xi32>
    %500 = arith.cmpi sge, %16, %499 : vector<1x120xi32>
    %c99_i32 = arith.constant 99 : i32
    %501 = vector.broadcast %c99_i32 : i32 to vector<1x120xi32>
    %502 = arith.cmpi slt, %16, %501 : vector<1x120xi32>
    %503 = arith.andi %500, %502 : vector<1x120xi1>
    %cst_108 = arith.constant -3.40282347E+38 : f32
    %504 = vector.shape_cast %503 : vector<1x120xi1> to vector<1x120xi1>
    %505 = vector.broadcast %504 : vector<1x120xi1> to vector<16x120xi1>
    %506 = vector.broadcast %cst_108 : f32 to vector<16x120xf32>
    %507 = arith.select %505, %3, %506 : vector<16x120xi1>, vector<16x120xf32>
    %cst_109 = arith.constant dense<0xFF800000> : vector<16xf32>
    %508 = vector.multi_reduction <maximumf>, %507, %cst_109 [1] : vector<16x120xf32> to vector<16xf32>
    %509 = vector.shape_cast %508 : vector<16xf32> to vector<16x1xf32>
    %c24_i32_110 = arith.constant 24 : i32
    %510 = vector.broadcast %c24_i32_110 : i32 to vector<1x30xi32>
    %511 = arith.cmpi eq, %17, %510 : vector<1x30xi32>
    %cst_111 = arith.constant 0.000000e+00 : f32
    %512 = vector.shape_cast %511 : vector<1x30xi1> to vector<1x30xi1>
    %513 = vector.broadcast %512 : vector<1x30xi1> to vector<16x30xi1>
    %514 = vector.shape_cast %509 : vector<16x1xf32> to vector<16x1xf32>
    %515 = vector.broadcast %514 : vector<16x1xf32> to vector<16x30xf32>
    %516 = vector.broadcast %cst_111 : f32 to vector<16x30xf32>
    %517 = arith.select %513, %515, %516 : vector<16x30xi1>, vector<16x30xf32>
    %518 = arith.addf %498, %517 : vector<16x30xf32>
    %c99_i32_112 = arith.constant 99 : i32
    %519 = vector.broadcast %c99_i32_112 : i32 to vector<1x120xi32>
    %520 = arith.cmpi sge, %16, %519 : vector<1x120xi32>
    %c104_i32 = arith.constant 104 : i32
    %521 = vector.broadcast %c104_i32 : i32 to vector<1x120xi32>
    %522 = arith.cmpi slt, %16, %521 : vector<1x120xi32>
    %523 = arith.andi %520, %522 : vector<1x120xi1>
    %cst_113 = arith.constant -3.40282347E+38 : f32
    %524 = vector.shape_cast %523 : vector<1x120xi1> to vector<1x120xi1>
    %525 = vector.broadcast %524 : vector<1x120xi1> to vector<16x120xi1>
    %526 = vector.broadcast %cst_113 : f32 to vector<16x120xf32>
    %527 = arith.select %525, %3, %526 : vector<16x120xi1>, vector<16x120xf32>
    %cst_114 = arith.constant dense<0xFF800000> : vector<16xf32>
    %528 = vector.multi_reduction <maximumf>, %527, %cst_114 [1] : vector<16x120xf32> to vector<16xf32>
    %529 = vector.shape_cast %528 : vector<16xf32> to vector<16x1xf32>
    %c25_i32 = arith.constant 25 : i32
    %530 = vector.broadcast %c25_i32 : i32 to vector<1x30xi32>
    %531 = arith.cmpi eq, %17, %530 : vector<1x30xi32>
    %cst_115 = arith.constant 0.000000e+00 : f32
    %532 = vector.shape_cast %531 : vector<1x30xi1> to vector<1x30xi1>
    %533 = vector.broadcast %532 : vector<1x30xi1> to vector<16x30xi1>
    %534 = vector.shape_cast %529 : vector<16x1xf32> to vector<16x1xf32>
    %535 = vector.broadcast %534 : vector<16x1xf32> to vector<16x30xf32>
    %536 = vector.broadcast %cst_115 : f32 to vector<16x30xf32>
    %537 = arith.select %533, %535, %536 : vector<16x30xi1>, vector<16x30xf32>
    %538 = arith.addf %518, %537 : vector<16x30xf32>
    %c104_i32_116 = arith.constant 104 : i32
    %539 = vector.broadcast %c104_i32_116 : i32 to vector<1x120xi32>
    %540 = arith.cmpi sge, %16, %539 : vector<1x120xi32>
    %c108_i32 = arith.constant 108 : i32
    %541 = vector.broadcast %c108_i32 : i32 to vector<1x120xi32>
    %542 = arith.cmpi slt, %16, %541 : vector<1x120xi32>
    %543 = arith.andi %540, %542 : vector<1x120xi1>
    %cst_117 = arith.constant -3.40282347E+38 : f32
    %544 = vector.shape_cast %543 : vector<1x120xi1> to vector<1x120xi1>
    %545 = vector.broadcast %544 : vector<1x120xi1> to vector<16x120xi1>
    %546 = vector.broadcast %cst_117 : f32 to vector<16x120xf32>
    %547 = arith.select %545, %3, %546 : vector<16x120xi1>, vector<16x120xf32>
    %cst_118 = arith.constant dense<0xFF800000> : vector<16xf32>
    %548 = vector.multi_reduction <maximumf>, %547, %cst_118 [1] : vector<16x120xf32> to vector<16xf32>
    %549 = vector.shape_cast %548 : vector<16xf32> to vector<16x1xf32>
    %c26_i32 = arith.constant 26 : i32
    %550 = vector.broadcast %c26_i32 : i32 to vector<1x30xi32>
    %551 = arith.cmpi eq, %17, %550 : vector<1x30xi32>
    %cst_119 = arith.constant 0.000000e+00 : f32
    %552 = vector.shape_cast %551 : vector<1x30xi1> to vector<1x30xi1>
    %553 = vector.broadcast %552 : vector<1x30xi1> to vector<16x30xi1>
    %554 = vector.shape_cast %549 : vector<16x1xf32> to vector<16x1xf32>
    %555 = vector.broadcast %554 : vector<16x1xf32> to vector<16x30xf32>
    %556 = vector.broadcast %cst_119 : f32 to vector<16x30xf32>
    %557 = arith.select %553, %555, %556 : vector<16x30xi1>, vector<16x30xf32>
    %558 = arith.addf %538, %557 : vector<16x30xf32>
    %c108_i32_120 = arith.constant 108 : i32
    %559 = vector.broadcast %c108_i32_120 : i32 to vector<1x120xi32>
    %560 = arith.cmpi sge, %16, %559 : vector<1x120xi32>
    %c111_i32 = arith.constant 111 : i32
    %561 = vector.broadcast %c111_i32 : i32 to vector<1x120xi32>
    %562 = arith.cmpi slt, %16, %561 : vector<1x120xi32>
    %563 = arith.andi %560, %562 : vector<1x120xi1>
    %cst_121 = arith.constant -3.40282347E+38 : f32
    %564 = vector.shape_cast %563 : vector<1x120xi1> to vector<1x120xi1>
    %565 = vector.broadcast %564 : vector<1x120xi1> to vector<16x120xi1>
    %566 = vector.broadcast %cst_121 : f32 to vector<16x120xf32>
    %567 = arith.select %565, %3, %566 : vector<16x120xi1>, vector<16x120xf32>
    %cst_122 = arith.constant dense<0xFF800000> : vector<16xf32>
    %568 = vector.multi_reduction <maximumf>, %567, %cst_122 [1] : vector<16x120xf32> to vector<16xf32>
    %569 = vector.shape_cast %568 : vector<16xf32> to vector<16x1xf32>
    %c27_i32_123 = arith.constant 27 : i32
    %570 = vector.broadcast %c27_i32_123 : i32 to vector<1x30xi32>
    %571 = arith.cmpi eq, %17, %570 : vector<1x30xi32>
    %cst_124 = arith.constant 0.000000e+00 : f32
    %572 = vector.shape_cast %571 : vector<1x30xi1> to vector<1x30xi1>
    %573 = vector.broadcast %572 : vector<1x30xi1> to vector<16x30xi1>
    %574 = vector.shape_cast %569 : vector<16x1xf32> to vector<16x1xf32>
    %575 = vector.broadcast %574 : vector<16x1xf32> to vector<16x30xf32>
    %576 = vector.broadcast %cst_124 : f32 to vector<16x30xf32>
    %577 = arith.select %573, %575, %576 : vector<16x30xi1>, vector<16x30xf32>
    %578 = arith.addf %558, %577 : vector<16x30xf32>
    %c111_i32_125 = arith.constant 111 : i32
    %579 = vector.broadcast %c111_i32_125 : i32 to vector<1x120xi32>
    %580 = arith.cmpi sge, %16, %579 : vector<1x120xi32>
    %c116_i32 = arith.constant 116 : i32
    %581 = vector.broadcast %c116_i32 : i32 to vector<1x120xi32>
    %582 = arith.cmpi slt, %16, %581 : vector<1x120xi32>
    %583 = arith.andi %580, %582 : vector<1x120xi1>
    %cst_126 = arith.constant -3.40282347E+38 : f32
    %584 = vector.shape_cast %583 : vector<1x120xi1> to vector<1x120xi1>
    %585 = vector.broadcast %584 : vector<1x120xi1> to vector<16x120xi1>
    %586 = vector.broadcast %cst_126 : f32 to vector<16x120xf32>
    %587 = arith.select %585, %3, %586 : vector<16x120xi1>, vector<16x120xf32>
    %cst_127 = arith.constant dense<0xFF800000> : vector<16xf32>
    %588 = vector.multi_reduction <maximumf>, %587, %cst_127 [1] : vector<16x120xf32> to vector<16xf32>
    %589 = vector.shape_cast %588 : vector<16xf32> to vector<16x1xf32>
    %c28_i32 = arith.constant 28 : i32
    %590 = vector.broadcast %c28_i32 : i32 to vector<1x30xi32>
    %591 = arith.cmpi eq, %17, %590 : vector<1x30xi32>
    %cst_128 = arith.constant 0.000000e+00 : f32
    %592 = vector.shape_cast %591 : vector<1x30xi1> to vector<1x30xi1>
    %593 = vector.broadcast %592 : vector<1x30xi1> to vector<16x30xi1>
    %594 = vector.shape_cast %589 : vector<16x1xf32> to vector<16x1xf32>
    %595 = vector.broadcast %594 : vector<16x1xf32> to vector<16x30xf32>
    %596 = vector.broadcast %cst_128 : f32 to vector<16x30xf32>
    %597 = arith.select %593, %595, %596 : vector<16x30xi1>, vector<16x30xf32>
    %598 = arith.addf %578, %597 : vector<16x30xf32>
    %c116_i32_129 = arith.constant 116 : i32
    %599 = vector.broadcast %c116_i32_129 : i32 to vector<1x120xi32>
    %600 = arith.cmpi sge, %16, %599 : vector<1x120xi32>
    %c120_i32 = arith.constant 120 : i32
    %601 = vector.broadcast %c120_i32 : i32 to vector<1x120xi32>
    %602 = arith.cmpi slt, %16, %601 : vector<1x120xi32>
    %603 = arith.andi %600, %602 : vector<1x120xi1>
    %cst_130 = arith.constant -3.40282347E+38 : f32
    %604 = vector.shape_cast %603 : vector<1x120xi1> to vector<1x120xi1>
    %605 = vector.broadcast %604 : vector<1x120xi1> to vector<16x120xi1>
    %606 = vector.broadcast %cst_130 : f32 to vector<16x120xf32>
    %607 = arith.select %605, %3, %606 : vector<16x120xi1>, vector<16x120xf32>
    %cst_131 = arith.constant dense<0xFF800000> : vector<16xf32>
    %608 = vector.multi_reduction <maximumf>, %607, %cst_131 [1] : vector<16x120xf32> to vector<16xf32>
    %609 = vector.shape_cast %608 : vector<16xf32> to vector<16x1xf32>
    %c29_i32 = arith.constant 29 : i32
    %610 = vector.broadcast %c29_i32 : i32 to vector<1x30xi32>
    %611 = arith.cmpi eq, %17, %610 : vector<1x30xi32>
    %cst_132 = arith.constant 0.000000e+00 : f32
    %612 = vector.shape_cast %611 : vector<1x30xi1> to vector<1x30xi1>
    %613 = vector.broadcast %612 : vector<1x30xi1> to vector<16x30xi1>
    %614 = vector.shape_cast %609 : vector<16x1xf32> to vector<16x1xf32>
    %615 = vector.broadcast %614 : vector<16x1xf32> to vector<16x30xf32>
    %616 = vector.broadcast %cst_132 : f32 to vector<16x30xf32>
    %617 = arith.select %613, %615, %616 : vector<16x30xi1>, vector<16x30xf32>
    %618 = arith.addf %598, %617 : vector<16x30xf32>
    %c0_133 = arith.constant 0 : index
    %c0_134 = arith.constant 0 : index
    %619 = vector.load %arg5[%c0_133, %c0_134] : memref<30x120xf32, #tpu.memory_space<vmem>>, vector<30x120xf32>
    %cst_135 = arith.constant dense<0.000000e+00> : vector<16x120xf32>
    %620 = tpu.matmul %618, %619, %cst_135 {dimension_numbers = #tpu.dot_dimension_numbers<[1], [0], [0], [1], [0, 0, 1, 1], [], []>} : vector<16x30xf32>, vector<30x120xf32>, vector<16x120xf32> -> vector<16x120xf32>
    %621 = arith.subf %15, %620 : vector<16x120xf32>
    %622 = math.exp %621 : vector<16x120xf32>
    %c0_136 = arith.constant 0 : index
    %c0_137 = arith.constant 0 : index
    %623 = vector.load %arg4[%c0_136, %c0_137] : memref<120x30xf32, #tpu.memory_space<vmem>>, vector<120x30xf32>
    %cst_138 = arith.constant dense<0.000000e+00> : vector<16x30xf32>
    %624 = tpu.matmul %622, %623, %cst_138 {dimension_numbers = #tpu.dot_dimension_numbers<[1], [0], [0], [1], [0, 0, 1, 1], [], []>} : vector<16x120xf32>, vector<120x30xf32>, vector<16x30xf32> -> vector<16x30xf32>
    %c0_139 = arith.constant 0 : index
    %c0_140 = arith.constant 0 : index
    %625 = vector.load %arg3[%c0_139, %c0_140] : memref<16x30xi32, #tpu.memory_space<vmem>>, vector<16x30xi32>
    %626 = arith.sitofp %625 : vector<16x30xi32> to vector<16x30xf32>
    %cst_141 = arith.constant dense<0.000000e+00> : vector<16x120xf32>
    %627 = tpu.matmul %626, %619, %cst_141 {dimension_numbers = #tpu.dot_dimension_numbers<[1], [0], [0], [1], [0, 0, 1, 1], [], []>} : vector<16x30xf32>, vector<30x120xf32>, vector<16x120xf32> -> vector<16x120xf32>
    %628 = tpu.iota {dimensions = array<i32: 1>} : vector<16x120xi32>
    %629 = arith.fptosi %627 : vector<16x120xf32> to vector<16x120xi32>
    %630 = arith.cmpi eq, %628, %629 : vector<16x120xi32>
    %cst_142 = arith.constant 0.000000e+00 : f32
    %631 = vector.broadcast %cst_142 : f32 to vector<16x120xf32>
    %632 = arith.select %630, %15, %631 : vector<16x120xi1>, vector<16x120xf32>
    %cst_143 = arith.constant dense<0.000000e+00> : vector<16xf32>
    %633 = vector.multi_reduction <add>, %632, %cst_143 [1] : vector<16x120xf32> to vector<16xf32>
    %634 = vector.shape_cast %633 : vector<16xf32> to vector<16x1xf32>
    %635 = math.log %624 : vector<16x30xf32>
    %636 = arith.addf %618, %635 : vector<16x30xf32>
    %cst_144 = arith.constant dense<0.000000e+00> : vector<16xf32>
    %637 = vector.multi_reduction <add>, %636, %cst_144 [1] : vector<16x30xf32> to vector<16xf32>
    %638 = vector.shape_cast %637 : vector<16xf32> to vector<16x1xf32>
    %639 = arith.subf %638, %634 : vector<16x1xf32>
    %cst_145 = arith.constant 0.000000e+00 : f32
    %640 = vector.broadcast %cst_145 : f32 to vector<16x1xf32>
    %641 = arith.select %11, %639, %640 : vector<16x1xi1>, vector<16x1xf32>
    %c0_146 = arith.constant 0 : index
    %c0_147 = arith.constant 0 : index
    %642 = vector.load %arg7[%c0_146, %c0_147] : memref<16x1xf32, #tpu.memory_space<vmem>>, vector<16x1xf32>
    %643 = arith.addf %642, %641 : vector<16x1xf32>
    %c0_148 = arith.constant 0 : index
    %c0_149 = arith.constant 0 : index
    %644 = vector.load %arg7[%c0_148, %c0_149] : memref<16x1xf32, #tpu.memory_space<vmem>>, vector<16x1xf32>
    tpu.vector_store %arg7[%c0_148, %c0_149], %643 {strides = array<i32>} : memref<16x1xf32, #tpu.memory_space<vmem>>, vector<16x1xf32>,
    %c1_i32_150 = arith.constant 1 : i32
    %645 = arith.cmpi eq, %arg1, %c1_i32_150 : i32
    %646 = arith.extui %645 : i1 to i32
    %c0_i32_151 = arith.constant 0 : i32
    %647 = arith.cmpi ne, %646, %c0_i32_151 : i32
    scf.if %647 {
      %c0_152 = arith.constant 0 : index
      %c0_153 = arith.constant 0 : index
      %648 = vector.load %arg7[%c0_152, %c0_153] : memref<16x1xf32, #tpu.memory_space<vmem>>, vector<16x1xf32>
      %cst_154 = arith.constant dense<0.000000e+00> : vector<1xf32>
      %649 = vector.multi_reduction <add>, %648, %cst_154 [0] : vector<16x1xf32> to vector<1xf32>
      %650 = vector.shape_cast %649 : vector<1xf32> to vector<1x1xf32>
      %651 = tpu.iota {dimensions = array<i32: 0>} : vector<8x128xi32>
      %652 = tpu.iota {dimensions = array<i32: 1>} : vector<8x128xi32>
      %c0_i32_155 = arith.constant 0 : i32
      %653 = vector.broadcast %c0_i32_155 : i32 to vector<8x128xi32>
      %654 = arith.cmpi eq, %651, %653 : vector<8x128xi32>
      %c0_i32_156 = arith.constant 0 : i32
      %655 = vector.broadcast %c0_i32_156 : i32 to vector<8x128xi32>
      %656 = arith.cmpi eq, %652, %655 : vector<8x128xi32>
      %657 = arith.andi %654, %656 : vector<8x128xi1>
      %cst_157 = arith.constant 0.000000e+00 : f32
      %658 = vector.shape_cast %650 : vector<1x1xf32> to vector<1x1xf32>
      %659 = vector.broadcast %658 : vector<1x1xf32> to vector<8x128xf32>
      %660 = vector.broadcast %cst_157 : f32 to vector<8x128xf32>
      %661 = arith.select %657, %659, %660 : vector<8x128xi1>, vector<8x128xf32>
      %c0_158 = arith.constant 0 : index
      %c0_159 = arith.constant 0 : index
      %662 = vector.load %arg6[%c0_158, %c0_159] : memref<8x128xf32, #tpu.memory_space<vmem>>, vector<8x128xf32>
      tpu.vector_store %arg6[%c0_158, %c0_159], %661 {strides = array<i32>} : memref<8x128xf32, #tpu.memory_space<vmem>>, vector<8x128xf32>,
    } else {
    }
    return
  }
  func.func @transform_0(%arg0: i32, %arg1: i32) -> (i32, i32) {
    %c2_i32 = arith.constant 2 : i32
    %0 = arith.muli %arg0, %c2_i32 : i32
    %1 = arith.addi %0, %arg1 : i32
    %c2_i32_0 = arith.constant 2 : i32
    %2 = arith.minsi %1, %c2_i32_0 : i32
    %c0_i32 = arith.constant 0 : i32
    %c0_i32_1 = arith.constant 0 : i32
    return %2, %c0_i32 : i32, i32
  }
  func.func @transform_1(%arg0: i32, %arg1: i32) -> (i32, i32) {
    %c2_i32 = arith.constant 2 : i32
    %0 = arith.muli %arg0, %c2_i32 : i32
    %1 = arith.addi %0, %arg1 : i32
    %c2_i32_0 = arith.constant 2 : i32
    %2 = arith.minsi %1, %c2_i32_0 : i32
    %c0_i32 = arith.constant 0 : i32
    %c0_i32_1 = arith.constant 0 : i32
    return %2, %c0_i32 : i32, i32
  }
  func.func @transform_2(%arg0: i32, %arg1: i32) -> (i32, i32) {
    %c0_i32 = arith.constant 0 : i32
    %c0_i32_0 = arith.constant 0 : i32
    %c0_i32_1 = arith.constant 0 : i32
    return %c0_i32, %c0_i32_0 : i32, i32
  }
  func.func @transform_3(%arg0: i32, %arg1: i32) -> (i32, i32) {
    %c0_i32 = arith.constant 0 : i32
    %c0_i32_0 = arith.constant 0 : i32
    %c0_i32_1 = arith.constant 0 : i32
    return %c0_i32, %c0_i32_0 : i32, i32
  }
  func.func @transform_4(%arg0: i32, %arg1: i32) -> (i32, i32) {
    %c0_i32 = arith.constant 0 : i32
    %c0_i32_0 = arith.constant 0 : i32
    return %arg0, %c0_i32 : i32, i32
  }
}

</mosaic_0001>

<bundles_post_ra>
// kernel: tpu_custom_call.1
= control target key start
LH: loop header
LB: loop body
LE: loop exit
PB: predicated region body
PF: predicated region fallthrough
CT: control target
= control target key end

     0   :  { %9 = vsyncpa [#allocation4], 0  ;;  %s2330_s0 = inlined_call_operand.vmem [shape: f32[40,120], index: 0, kind: input, shape index: {}]   ;;  %s2331_s1 = inlined_call_operand.vmem [shape: s32[40,30], index: 1, kind: input, shape index: {}]   ;;  %s2332_s2 = inlined_call_operand.vmem [shape: f32[120,30], index: 2, kind: input, shape index: {}]   ;;  %s2333_s3 = inlined_call_operand.vmem [shape: f32[30,120], index: 3, kind: input, shape index: {}]   ;;  %s2334_s4 = inlined_call_operand.hbm [shape: f32[16,128], index: 4, kind: output, shape index: {}]  }
   0x1   :  { %11 = vsyncpa [#allocation4 + $0x1], 0  ;;  %s1499_s15 = smov 0   ;;  %s1501_s16 = smov 0  }
   0x2   :  { %s1503_s17 = smov 0   ;;  %s1505_s18 = smov 0  }
   0x3   :  { %s1507_s19 = smov 0   ;;  %s1509_s20 = smov 0  }
   0x4   :  { %s1511_s21 = smov 0   ;;  %s1513_s22 = smov 0  }
   0x5 LB: > { %s1235_s23 = sadd.s32 4294967295, %s1470_s22   ;;  %s1236_s24 = sadd.s32 4294967294, %s1470_s22   ;;  %s1470_s22 = sphi %s1513_s22, %s17_s22   ;;  %s1466_s21 = sphi %s1511_s21, %s2403_s21   ;;  %s1462_s20 = sphi %s1509_s20, %s2402_s20   ;;  %s1458_s19 = sphi %s1507_s19, %s2401_s19   ;;  %s1454_s18 = sphi %s1505_s18, %s2400_s18   ;;  %s1450_s17 = sphi %s1503_s17, %s2399_s17   ;;  %s1446_s16 = sphi %s1501_s16, %s2398_s16   ;;  %s1442_s15 = sphi %s1499_s15, %s2397_s15  }
   0x6   : > { %s26_s25 = sadd.s32 1, %s1462_s20  ;;  %s29_s26 = sadd.s32 1, %s1466_s21 }
   0x7   : > { %p27_p0 = scmp.ge.s32.totalorder %s26_s25, 2  ;;  %p156_p1 = scmp.ne.s32.totalorder %s1450_s17, %s1446_s16 }
   0x8   : > { %p157_p2 = scmp.eq.s32.totalorder %s1235_s23, 3  ;;  %p162_p4 = scmp.ne.s32.totalorder %s1446_s16, %s1442_s15 }
   0x9   : > { %s2405_s25 = smov (%p27_p0, %s26_s25), 0  ;;  %s2407_s26 = smov (!%p27_p0, %s29_s26), %s1466_s21 }
   0xa   : > { %p1548_p3 = por %p157_p2, %p156_p1  ;;  %p31_p5 = scmp.ge.s32.totalorder %s2407_s26, 2 }
   0xb   : > { %p163_p6 = scmp.eq.s32.totalorder %s1236_s24, 3  ;;  %p1243_p7 = scmp.ge.s32.totalorder %s1470_s22, 1 }
   0xc   : > { %p237_p8 = scmp.lt.s32.totalorder %s1470_s22, 5  ;;  %s2409_s26 = smov (%p31_p5, %s2407_s26), 0 }
   0xd   : > { %p1558_p9 = por %p163_p6, %p162_p4  ;;  %s143_s29 = ssub.s32 %s1466_s21, %s2409_s26 }
   0xe   : > { %p238_p10 = pnand %p1243_p7, %p237_p8  ;;  %s146_s30 = sadd.s32 1, %s1450_s17 }
   0xf   : > { %p144_p11 = scmp.eq.s32.totalorder %s143_s29, 0  ;;  %s2335_s6 = sand.u32 (!%p238_p10), 1, %s1446_s16  }
  0x10   : > { %241 = sbr.rel (%p238_p10) target bundleno = 871 (0x367), region = 36  ;;  %s1245_s7 = sshll.u32 (!%p238_p10), %s1458_s19, 1 }
  0x11   : > { %s1566_s5 = scalar_select %p144_p11, %s1450_s17, %s146_s30  }
  0x12   : > { %s1572_s8 = sshll.u32 (!%p238_p10), %s2335_s6, 3  ;;  %s1575_s9 = sadd.s32 (!%p238_p10), %s1454_s18, %s1245_s7 }
  0x13   : > { %p286_p12 = scmp.lt.s32.totalorder (!%p238_p10), %s1575_s9, 2  ;;  %s283_s7 = scalar_lea.vmem (!%p238_p10), [#allocation3], %s1572_s8 }
  0x14   : > { %p1251_p0 = scmp.ne.s32.totalorder (!%p238_p10), %s1454_s18, 0 }
  0x15   : > { %s287_s10 = scalar_select %p286_p12, %s1575_s9, 2 }
  0x17   : > { %s1246_s11 = sshll.u32 %s287_s10, 1 }
  0x18   : > { %p293_p13 = scmp.lt.s32.totalorder %s1246_s11, 4  ;;  %331 = sbr.rel (%p1251_p0) target bundleno = 32 (0x20), region = 40 }
  0x1a   : > { %s2411_s11 = smov (!%p293_p13, %s1246_s11), 4 }
  0x1b   : > { %s1247_s12 = sshll.u32 %s2411_s11, 3 }
  0x1c   : > { %s1582_s23 = scalar_lea.vmem %s2330_s0, %s1247_s12  ;;  %s1587_s30 = scalar_lea.vmem %s2331_s1, %s1247_s12 }
  0x1d   : > { %vm332_vm0 = vcmask 7168   ;;  %v1472_v0 = vmov 0.0  }
  0x1e   : > { %333 = vst.msk [vmem:[#allocation2] sm:$0xff] %vm332_vm0, %v1472_v0 }
  0x1f   : > { %334 = vst.msk [vmem:[#allocation2 + $0x8] sm:$0xff] %vm332_vm0, %v1472_v0 }
  0x20 PF: > { %v340_v1 = vlaneseq  ;;  %v1592_v2 = vld [vmem:[%s1582_s23] sm:$0xff]  ;;  %v1598_v4 = vld [vmem:[%s1582_s23 + $0x8] sm:$0xff]  ;;  %vm363_vm1 = vcmask 982016   ;;  %s1253_s6 = sshll.u32 %s1575_s9, 4  ;;  %p1262_p1 = scmp.ne.s32.totalorder %s1454_s18, 1 }
  0x22   : > { %v1595_v3 = vand.u32 127, %v340_v1 }
  0x24   : > { %vm357_vm2 = vcmp.lt.s32.totalorder %v1595_v3, 3  ;;  %vm397_vm3 = vcmp.ge.s32.totalorder %v1595_v3, 8  ;;  %vm398_vm4 = vcmp.lt.s32.totalorder %v1595_v3, 12  ;;  %vm377_vm5 = vcmp.ge.s32.totalorder %v1595_v3, 3 }
  0x25   : > { %v361_v5 = vsel %vm357_vm2, %v1592_v2, -3.4028235e+38  ;;  %vm1605_vm6 = vmand %vm397_vm3, %vm398_vm4  ;;  %v362_v7 = vsel %vm357_vm2, %v1598_v4, -3.4028235e+38  ;;  %vm378_vm7 = vcmp.lt.s32.totalorder %v1595_v3, 8  ;;  %vm417_vm8 = vcmp.ge.s32.totalorder %v1595_v3, 12 }
  0x26   : > { %v364_v8 = vsel %vm363_vm1, %v361_v5, -inf  ;;  %v402_v9 = vsel %vm1605_vm6, %v1592_v2, -3.4028235e+38  ;;  %v367_v10 = vsel %vm363_vm1, %v362_v7, -inf  ;;  %vm1617_vm9 = vmand %vm377_vm5, %vm378_vm7  ;;  %vm418_vm10 = vcmp.lt.s32.totalorder %v1595_v3, 15 }
  0x27   : > { %365 = vmax.xlane.f32.xlu0 %v364_v8  ;;  %v404_v12 = vsel %vm363_vm1, %v402_v9, -inf  ;;  %368 = vmax.xlane.f32.xlu2 %v367_v10  ;;  %vm1623_vm11 = vmand %vm417_vm8, %vm418_vm10  ;;  %vm437_vm12 = vcmp.ge.s32.totalorder %v1595_v3, 15  ;;  %vm438_vm13 = vcmp.lt.s32.totalorder %v1595_v3, 20  ;;  %v382_v15 = vsel %vm1617_vm9, %v1592_v2, -3.4028235e+38 }
  0x28   : > { %405 = vmax.xlane.f32.xlu1 %v404_v12  ;;  %vm1629_vm14 = vmand %vm437_vm12, %vm438_vm13  ;;  %v422_v17 = vsel %vm1623_vm11, %v1592_v2, -3.4028235e+38  ;;  %v384_v18 = vsel %vm363_vm1, %v382_v15, -inf  ;;  %vm457_vm15 = vcmp.ge.s32.totalorder %v1595_v3, 20  ;;  %vm458_vm0 = vcmp.lt.s32.totalorder %v1595_v3, 24 }
  0x29   : > { %v442_v16 = vsel %vm1629_vm14, %v1592_v2, -3.4028235e+38  ;;  %v424_v20 = vsel %vm363_vm1, %v422_v17, -inf  ;;  %vm1647_vm2 = vmand %vm457_vm15, %vm458_vm0  ;;  %v383_v22 = vsel %vm1617_vm9, %v1598_v4, -3.4028235e+38  ;;  %vm477_vm3 = vcmp.ge.s32.totalorder %v1595_v3, 24 }
  0x2a   : > { %v444_v19 = vsel %vm363_vm1, %v442_v16, -inf  ;;  %v403_v23 = vsel %vm1605_vm6, %v1598_v4, -3.4028235e+38  ;;  %v462_v24 = vsel %vm1647_vm2, %v1592_v2, -3.4028235e+38  ;;  %vm478_vm4 = vcmp.lt.s32.totalorder %v1595_v3, 27 }
  0x2b   : > { %vm497_vm5 = vcmp.ge.s32.totalorder %v1595_v3, 27  ;;  %vm498_vm7 = vcmp.lt.s32.totalorder %v1595_v3, 32  ;;  %v387_v25 = vsel %vm363_vm1, %v383_v22, -inf  ;;  %v407_v26 = vsel %vm363_vm1, %v403_v23, -inf  ;;  %vm1667_vm8 = vmand %vm477_vm3, %vm478_vm4 }
  0x2c   : > { %v464_v27 = vsel %vm363_vm1, %v462_v24, -inf  ;;  %vm1671_vm6 = vmand %vm497_vm5, %vm498_vm7  ;;  %v482_v30 = vsel %vm1667_vm8, %v1592_v2, -3.4028235e+38  ;;  %v423_v32 = vsel %vm1623_vm11, %v1598_v4, -3.4028235e+38  ;;  %vm517_vm9 = vcmp.ge.s32.totalorder %v1595_v3, 32 }
  0x2d   : > { %v502_v31 = vsel %vm1671_vm6, %v1592_v2, -3.4028235e+38  ;;  %v484_v33 = vsel %vm363_vm1, %v482_v30, -inf  ;;  %vm518_vm10 = vcmp.lt.s32.totalorder %v1595_v3, 36  ;;  %v427_v35 = vsel %vm363_vm1, %v423_v32, -inf }
  0x2e   : > { %v504_v34 = vsel %vm363_vm1, %v502_v31, -inf  ;;  %vm1689_vm12 = vmand %vm517_vm9, %vm518_vm10  ;;  %v443_v37 = vsel %vm1629_vm14, %v1598_v4, -3.4028235e+38  ;;  %v463_v38 = vsel %vm1647_vm2, %v1598_v4, -3.4028235e+38  ;;  %vm537_vm11 = vcmp.ge.s32.totalorder %v1595_v3, 36 }
  0x2f   : > { %385 = vmax.xlane.f32.xlu0 %v384_v18  ;;  %445 = vmax.xlane.f32.xlu2 %v444_v19  ;;  %v522_v39 = vsel %vm1689_vm12, %v1592_v2, -3.4028235e+38  ;;  %vm538_vm13 = vcmp.lt.s32.totalorder %v1595_v3, 39  ;;  %vm557_vm15 = vcmp.ge.s32.totalorder %v1595_v3, 39  ;;  %vm558_vm0 = vcmp.lt.s32.totalorder %v1595_v3, 44 }
  0x30   : > { %425 = vmax.xlane.f32.xlu1 %v424_v20  ;;  %v447_v40 = vsel %vm363_vm1, %v443_v37, -inf  ;;  %v467_v41 = vsel %vm363_vm1, %v463_v38, -inf  ;;  %v524_v42 = vsel %vm363_vm1, %v522_v39, -inf  ;;  %vm1709_vm14 = vmand %vm537_vm11, %vm538_vm13  ;;  %v483_v47 = vsel %vm1667_vm8, %v1598_v4, -3.4028235e+38 }
  0x31   : > { %vm1713_vm2 = vmand %vm557_vm15, %vm558_vm0  ;;  %v542_v45 = vsel %vm1709_vm14, %v1592_v2, -3.4028235e+38  ;;  %vm577_vm3 = vcmp.ge.s32.totalorder %v1595_v3, 44  ;;  %vm578_vm4 = vcmp.lt.s32.totalorder %v1595_v3, 48  ;;  %v487_v50 = vsel %vm363_vm1, %v483_v47, -inf }
  0x32   : > { %v562_v46 = vsel %vm1713_vm2, %v1592_v2, -3.4028235e+38  ;;  %v544_v48 = vsel %vm363_vm1, %v542_v45, -inf  ;;  %vm1731_vm5 = vmand %vm577_vm3, %vm578_vm4  ;;  %v503_v52 = vsel %vm1671_vm6, %v1598_v4, -3.4028235e+38  ;;  %vm597_vm7 = vcmp.ge.s32.totalorder %v1595_v3, 48 }
  0x33   : > { %v564_v49 = vsel %vm363_vm1, %v562_v46, -inf  ;;  %v523_v53 = vsel %vm1689_vm12, %v1598_v4, -3.4028235e+38  ;;  %v582_v54 = vsel %vm1731_vm5, %v1592_v2, -3.4028235e+38  ;;  %vm598_vm8 = vcmp.lt.s32.totalorder %v1595_v3, 51 }
  0x34   : > { %vm617_vm9 = vcmp.ge.s32.totalorder %v1595_v3, 51  ;;  %vm618_vm10 = vcmp.lt.s32.totalorder %v1595_v3, 56  ;;  %v507_v55 = vsel %vm363_vm1, %v503_v52, -inf  ;;  %v527_v56 = vsel %vm363_vm1, %v523_v53, -inf  ;;  %vm1751_vm6 = vmand %vm597_vm7, %vm598_vm8 }
  0x35   : > { %v584_v57 = vsel %vm363_vm1, %v582_v54, -inf  ;;  %vm1755_vm12 = vmand %vm617_vm9, %vm618_vm10  ;;  %v602_v60 = vsel %vm1751_vm6, %v1592_v2, -3.4028235e+38  ;;  %v543_v62 = vsel %vm1709_vm14, %v1598_v4, -3.4028235e+38  ;;  %vm637_vm11 = vcmp.ge.s32.totalorder %v1595_v3, 56 }
  0x36   : > { %v622_v61 = vsel %vm1755_vm12, %v1592_v2, -3.4028235e+38  ;;  %v604_v63 = vsel %vm363_vm1, %v602_v60, -inf  ;;  %vm638_vm13 = vcmp.lt.s32.totalorder %v1595_v3, 60  ;;  %v547_v5 = vsel %vm363_vm1, %v543_v62, -inf }
  0x37   : > { %388 = vmax.xlane.f32.xlu0 %v387_v25  ;;  %408 = vmax.xlane.f32.xlu2 %v407_v26  ;;  %v624_v0 = vsel %vm363_vm1, %v622_v61, -inf  ;;  %vm1773_vm15 = vmand %vm637_vm11, %vm638_vm13  ;;  %v563_v7 = vsel %vm1713_vm2, %v1598_v4, -3.4028235e+38  ;;  %v583_v8 = vsel %vm1731_vm5, %v1598_v4, -3.4028235e+38  ;;  %vm657_vm0 = vcmp.ge.s32.totalorder %v1595_v3, 60 }
  0x38   : > { %465 = vmax.xlane.f32.xlu1 %v464_v27  ;;  %v642_v9 = vsel %vm1773_vm15, %v1592_v2, -3.4028235e+38  ;;  %vm658_vm14 = vcmp.lt.s32.totalorder %v1595_v3, 63  ;;  %vm677_vm3 = vcmp.ge.s32.totalorder %v1595_v3, 63  ;;  %vm678_vm4 = vcmp.lt.s32.totalorder %v1595_v3, 68 }
  0x39   : > { %v567_v10 = vsel %vm363_vm1, %v563_v7, -inf  ;;  %v587_v11 = vsel %vm363_vm1, %v583_v8, -inf  ;;  %v644_v12 = vsel %vm363_vm1, %v642_v9, -inf  ;;  %vm1793_vm2 = vmand %vm657_vm0, %vm658_vm14  ;;  %v603_v17 = vsel %vm1751_vm6, %v1598_v4, -3.4028235e+38 }
  0x3a   : > { %vm1797_vm5 = vmand %vm677_vm3, %vm678_vm4  ;;  %v662_v15 = vsel %vm1793_vm2, %v1592_v2, -3.4028235e+38  ;;  %vm697_vm7 = vcmp.ge.s32.totalorder %v1595_v3, 68  ;;  %vm698_vm8 = vcmp.lt.s32.totalorder %v1595_v3, 72  ;;  %v607_v20 = vsel %vm363_vm1, %v603_v17, -inf }
  0x3b   : > { %v682_v16 = vsel %vm1797_vm5, %v1592_v2, -3.4028235e+38  ;;  %v664_v18 = vsel %vm363_vm1, %v662_v15, -inf  ;;  %vm1815_vm9 = vmand %vm697_vm7, %vm698_vm8  ;;  %v623_v22 = vsel %vm1755_vm12, %v1598_v4, -3.4028235e+38  ;;  %vm717_vm10 = vcmp.ge.s32.totalorder %v1595_v3, 72 }
  0x3c   : > { %v684_v19 = vsel %vm363_vm1, %v682_v16, -inf  ;;  %v643_v23 = vsel %vm1773_vm15, %v1598_v4, -3.4028235e+38  ;;  %v702_v24 = vsel %vm1815_vm9, %v1592_v2, -3.4028235e+38  ;;  %vm718_vm6 = vcmp.lt.s32.totalorder %v1595_v3, 75 }
  0x3d   : > { %vm737_vm11 = vcmp.ge.s32.totalorder %v1595_v3, 75  ;;  %vm738_vm13 = vcmp.lt.s32.totalorder %v1595_v3, 80  ;;  %v627_v25 = vsel %vm363_vm1, %v623_v22, -inf  ;;  %v647_v26 = vsel %vm363_vm1, %v643_v23, -inf  ;;  %vm1835_vm12 = vmand %vm717_vm10, %vm718_vm6 }
  0x3e   : > { %v704_v27 = vsel %vm363_vm1, %v702_v24, -inf  ;;  %vm1839_vm15 = vmand %vm737_vm11, %vm738_vm13  ;;  %v722_v30 = vsel %vm1835_vm12, %v1592_v2, -3.4028235e+38  ;;  %v663_v32 = vsel %vm1793_vm2, %v1598_v4, -3.4028235e+38  ;;  %vm757_vm0 = vcmp.ge.s32.totalorder %v1595_v3, 80 }
  0x3f   : > { %485 = vmax.xlane.f32.xlu0 %v484_v33  ;;  %505 = vmax.xlane.f32.xlu2 %v504_v34  ;;  %v742_v31 = vsel %vm1839_vm15, %v1592_v2, -3.4028235e+38  ;;  %v724_v33 = vsel %vm363_vm1, %v722_v30, -inf  ;;  %vm758_vm14 = vcmp.lt.s32.totalorder %v1595_v3, 84  ;;  %v683_v37 = vsel %vm1797_vm5, %v1598_v4, -3.4028235e+38 }
  0x40   : > { %428 = vmax.xlane.f32.xlu1 %v427_v35  ;;  %v744_v34 = vsel %vm363_vm1, %v742_v31, -inf  ;;  %v667_v35 = vsel %vm363_vm1, %v663_v32, -inf  ;;  %vm1857_vm3 = vmand %vm757_vm0, %vm758_vm14  ;;  %v703_v38 = vsel %vm1815_vm9, %v1598_v4, -3.4028235e+38  ;;  %vm777_vm4 = vcmp.ge.s32.totalorder %v1595_v3, 84 }
  0x41   : > { %v762_v39 = vsel %vm1857_vm3, %v1592_v2, -3.4028235e+38  ;;  %vm778_vm2 = vcmp.lt.s32.totalorder %v1595_v3, 87  ;;  %vm797_vm7 = vcmp.ge.s32.totalorder %v1595_v3, 87  ;;  %vm798_vm8 = vcmp.lt.s32.totalorder %v1595_v3, 92 }
  0x42   : > { %vm1877_vm5 = vmand %vm777_vm4, %vm778_vm2  ;;  %v723_v47 = vsel %vm1835_vm12, %v1598_v4, -3.4028235e+38  ;;  %vm817_vm10 = vcmp.ge.s32.totalorder %v1595_v3, 92  ;;  %vm818_vm6 = vcmp.lt.s32.totalorder %v1595_v3, 96  ;;  %v743_v52 = vsel %vm1839_vm15, %v1598_v4, -3.4028235e+38 }
  0x43   : > { %vm1881_vm9 = vmand %vm797_vm7, %vm798_vm8  ;;  %v782_v45 = vsel %vm1877_vm5, %v1592_v2, -3.4028235e+38  ;;  %v763_v53 = vsel %vm1857_vm3, %v1598_v4, -3.4028235e+38  ;;  %vm837_vm13 = vcmp.ge.s32.totalorder %v1595_v3, 96  ;;  %vm838_vm12 = vcmp.lt.s32.totalorder %v1595_v3, 99 }
  0x44   : > { %v802_v46 = vsel %vm1881_vm9, %v1592_v2, -3.4028235e+38  ;;  %vm1899_vm11 = vmand %vm817_vm10, %vm818_vm6  ;;  %vm857_vm0 = vcmp.ge.s32.totalorder %v1595_v3, 99  ;;  %vm858_vm14 = vcmp.lt.s32.totalorder %v1595_v3, 104  ;;  %vm877_vm4 = vcmp.ge.s32.totalorder %v1595_v3, 104 }
  0x45   : > { %v822_v54 = vsel %vm1899_vm11, %v1592_v2, -3.4028235e+38  ;;  %vm1919_vm15 = vmand %vm837_vm13, %vm838_vm12  ;;  %vm878_vm2 = vcmp.lt.s32.totalorder %v1595_v3, 108  ;;  %vm370_vm8 = vcmp.eq.s32.totalorder %v1595_v3, 0  ;;  %vm897_vm10 = vcmp.ge.s32.totalorder %v1595_v3, 108 }
  0x46   : > { %vm1923_vm3 = vmand %vm857_vm0, %vm858_vm14  ;;  %v842_v60 = vsel %vm1919_vm15, %v1592_v2, -3.4028235e+38  ;;  %vm898_vm6 = vcmp.lt.s32.totalorder %v1595_v3, 111  ;;  %vm410_vm13 = vcmp.eq.s32.totalorder %v1595_v3, 2  ;;  %vm917_vm12 = vcmp.ge.s32.totalorder %v1595_v3, 111 }
  0x47   : > { %448 = vmax.xlane.f32.xlu0 %v447_v40  ;;  %468 = vmax.xlane.f32.xlu2 %v467_v41  ;;  %v687_v40 = vsel %vm363_vm1, %v683_v37, -inf  ;;  %v707_v41 = vsel %vm363_vm1, %v703_v38, -inf  ;;  %v862_v61 = vsel %vm1923_vm3, %v1592_v2, -3.4028235e+38  ;;  %v844_v6 = vsel %vm363_vm1, %v842_v60, -inf  ;;  %vm1941_vm7 = vmand %vm877_vm4, %vm878_vm2 }
  0x48   : > { %525 = vmax.xlane.f32.xlu1 %v524_v42  ;;  %v764_v42 = vsel %vm363_vm1, %v762_v39, -inf  ;;  %v864_v7 = vsel %vm363_vm1, %v862_v61, -inf  ;;  %v882_v14 = vsel %vm1941_vm7, %v1592_v2, -3.4028235e+38  ;;  %vm1970_vm0 = vmand %vm897_vm10, %vm898_vm6  ;;  %vm450_vm4 = vcmp.eq.s32.totalorder %v1595_v3, 4 }
  0x49   : > { %v884_v23 = vsel %vm363_vm1, %v882_v14, -inf  ;;  %vm470_vm2 = vcmp.eq.s32.totalorder %v1595_v3, 5  ;;  %vm937_vm10 = vcmp.ge.s32.totalorder %v1595_v3, 116  ;;  %vm490_vm6 = vcmp.eq.s32.totalorder %v1595_v3, 6 }
  0x4f   : > { %545 = vmax.xlane.f32.xlu0 %v544_v48  ;;  %565 = vmax.xlane.f32.xlu2 %v564_v49  ;;  %v784_v48 = vsel %vm363_vm1, %v782_v45, -inf  ;;  %v804_v49 = vsel %vm363_vm1, %v802_v46, -inf }
  0x50   : > { %488 = vmax.xlane.f32.xlu1 %v487_v50  ;;  %v727_v50 = vsel %vm363_vm1, %v723_v47, -inf  ;;  %v863_v47 = vsel %vm1923_vm3, %v1598_v4, -3.4028235e+38  ;;  %vm530_vm3 = vcmp.eq.s32.totalorder %v1595_v3, 8 }
  0x57   : > { %508 = vmax.xlane.f32.xlu0 %v507_v55  ;;  %528 = vmax.xlane.f32.xlu2 %v527_v56  ;;  %v747_v55 = vsel %vm363_vm1, %v743_v52, -inf  ;;  %v767_v56 = vsel %vm363_vm1, %v763_v53, -inf }
  0x58   : > { %585 = vmax.xlane.f32.xlu1 %v584_v57  ;;  %v824_v57 = vsel %vm363_vm1, %v822_v54, -inf }
  0x5f   : > { %605 = vmax.xlane.f32.xlu0 %v604_v63  ;;  %625 = vmax.xlane.f32.xlu2 %v624_v0  ;;  %v783_v0 = vsel %vm1877_vm5, %v1598_v4, -3.4028235e+38  ;;  %vm390_vm5 = vcmp.eq.s32.totalorder %v1595_v3, 1 }
  0x60   : > { %548 = vmax.xlane.f32.xlu1 %v547_v5  ;;  %v787_v8 = vsel %vm363_vm1, %v783_v0, -inf }
  0x67   : > { %568 = vmax.xlane.f32.xlu0 %v567_v10  ;;  %588 = vmax.xlane.f32.xlu2 %v587_v11  ;;  %v803_v10 = vsel %vm1881_vm9, %v1598_v4, -3.4028235e+38  ;;  %v823_v11 = vsel %vm1899_vm11, %v1598_v4, -3.4028235e+38  ;;  %vm918_vm9 = vcmp.lt.s32.totalorder %v1595_v3, 116  ;;  %vm430_vm11 = vcmp.eq.s32.totalorder %v1595_v3, 3 }
  0x68   : > { %645 = vmax.xlane.f32.xlu1 %v644_v12  ;;  %vm1977_vm14 = vmand %vm917_vm12, %vm918_vm9  ;;  %vm570_vm12 = vcmp.eq.s32.totalorder %v1595_v3, 10  ;;  %vm590_vm9 = vcmp.eq.s32.totalorder %v1595_v3, 11 }
  0x69   : > { %v922_v29 = vsel %vm1977_vm14, %v1592_v2, -3.4028235e+38 }
  0x6f   : > { %665 = vmax.xlane.f32.xlu0 %v664_v18  ;;  %685 = vmax.xlane.f32.xlu2 %v684_v19  ;;  %v807_v19 = vsel %vm363_vm1, %v803_v10, -inf }
  0x70   : > { %608 = vmax.xlane.f32.xlu1 %v607_v20  ;;  %v827_v20 = vsel %vm363_vm1, %v823_v11, -inf }
  0x77   : > { %628 = vmax.xlane.f32.xlu0 %v627_v25  ;;  %648 = vmax.xlane.f32.xlu2 %v647_v26 }
  0x78   : > { %705 = vmax.xlane.f32.xlu1 %v704_v27  ;;  %v902_v27 = vsel %vm1970_vm0, %v1592_v2, -3.4028235e+38 }
  0x7f   : > { %725 = vmax.xlane.f32.xlu0 %v724_v33  ;;  %745 = vmax.xlane.f32.xlu2 %v744_v34  ;;  %v904_v34 = vsel %vm363_vm1, %v902_v27, -inf }
  0x80   : > { %668 = vmax.xlane.f32.xlu1 %v667_v35  ;;  %v843_v35 = vsel %vm1919_vm15, %v1598_v4, -3.4028235e+38  ;;  %vm938_vm15 = vcmp.lt.s32.totalorder %v1595_v3, 120 }
  0x81   : > { %v847_v44 = vsel %vm363_vm1, %v843_v35, -inf }
  0x87   : > { %688 = vmax.xlane.f32.xlu0 %v687_v40  ;;  %708 = vmax.xlane.f32.xlu2 %v707_v41  ;;  %v924_v40 = vsel %vm363_vm1, %v922_v29, -inf }
  0x88   : > { %765 = vmax.xlane.f32.xlu1 %v764_v42 }
  0x8f   : > { %785 = vmax.xlane.f32.xlu0 %v784_v48  ;;  %805 = vmax.xlane.f32.xlu2 %v804_v49  ;;  %v883_v48 = vsel %vm1941_vm7, %v1598_v4, -3.4028235e+38  ;;  %vm550_vm7 = vcmp.eq.s32.totalorder %v1595_v3, 9 }
  0x90   : > { %728 = vmax.xlane.f32.xlu1 %v727_v50  ;;  %v887_v58 = vsel %vm363_vm1, %v883_v48, -inf }
  0x97   : > { %748 = vmax.xlane.f32.xlu0 %v747_v55  ;;  %768 = vmax.xlane.f32.xlu2 %v767_v56 }
  0x98   : > { %825 = vmax.xlane.f32.xlu1 %v824_v57  ;;  %v867_v57 = vsel %vm363_vm1, %v863_v47, -inf }
  0x9a   : > { %v366_v62 = vpop.xlane.xlu0 %365  ;;  %v369_v63 = vpop.xlane.xlu2 %368 }
  0x9b   : > { %v406_v5 = vpop.xlane.xlu1 %405  ;;  %v373_v15 = vsel %vm370_vm8, %v366_v62, 0.0  ;;  %v374_v36 = vsel %vm370_vm8, %v369_v63, 0.0 }
  0x9c   : > { %v413_v22 = vsel %vm410_vm13, %v406_v5, 0.0  ;;  %v923_v5 = vsel %vm1977_vm14, %v1598_v4, -3.4028235e+38  ;;  %vm650_vm14 = vcmp.eq.s32.totalorder %v1595_v3, 14 }
  0x9d   : > { %v927_v14 = vsel %vm363_vm1, %v923_v5, -inf  ;;  %v959_v5 = vld [vmem:[%s2333_s3 + $0x10] sm:$0xff] }
  0x9f   : > { %845 = vmax.xlane.f32.xlu0 %v844_v6  ;;  %865 = vmax.xlane.f32.xlu2 %v864_v7 }
  0xa0   : > { %788 = vmax.xlane.f32.xlu1 %v787_v8 }
  0xa2   : > { %v386_v12 = vpop.xlane.xlu0 %385  ;;  %v446_v13 = vpop.xlane.xlu2 %445 }
  0xa3   : > { %v393_v16 = vsel %vm390_vm5, %v386_v12, 0.0  ;;  %v426_v17 = vpop.xlane.xlu1 %425  ;;  %v453_v30 = vsel %vm450_vm4, %v446_v13, 0.0 }
  0xa4   : > { %v395_v18 = vadd.f32 %v393_v16, %v373_v15  ;;  %v433_v26 = vsel %vm430_vm11, %v426_v17, 0.0 }
  0xa6   : > { %v415_v25 = vadd.f32 %v413_v22, %v395_v18 }
  0xa7   : > { %808 = vmax.xlane.f32.xlu0 %v807_v19  ;;  %828 = vmax.xlane.f32.xlu2 %v827_v20 }
  0xa8   : > { %v435_v28 = vadd.f32 %v433_v26, %v415_v25  ;;  %885 = vmax.xlane.f32.xlu1 %v884_v23 }
  0xaa   : > { %v455_v31 = vadd.f32 %v453_v30, %v435_v28  ;;  %v389_v32 = vpop.xlane.xlu0 %388  ;;  %v409_v33 = vpop.xlane.xlu2 %408 }
  0xab   : > { %v394_v37 = vsel %vm390_vm5, %v389_v32, 0.0  ;;  %v466_v38 = vpop.xlane.xlu1 %465  ;;  %v414_v39 = vsel %vm410_vm13, %v409_v33, 0.0  ;;  %vm2009_vm5 = vmand %vm937_vm10, %vm938_vm15  ;;  %vm510_vm13 = vcmp.eq.s32.totalorder %v1595_v3, 7  ;;  %vm968_vm10 = vcmask 1045504  }
  0xac   : > { %v396_v41 = vadd.f32 %v394_v37, %v374_v36  ;;  %v473_v42 = vsel %vm470_vm2, %v466_v38, 0.0  ;;  %v942_v51 = vsel %vm2009_vm5, %v1592_v2, -3.4028235e+38  ;;  %v903_v2 = vsel %vm1970_vm0, %v1598_v4, -3.4028235e+38 }
  0xad   : > { %v475_v43 = vadd.f32 %v473_v42, %v455_v31  ;;  %v944_v60 = vsel %vm363_vm1, %v942_v51, -inf  ;;  %v943_v62 = vsel %vm2009_vm5, %v1598_v4, -3.4028235e+38  ;;  %v907_v11 = vsel %vm363_vm1, %v903_v2, -inf }
  0xae   : > { %v416_v45 = vadd.f32 %v414_v39, %v396_v41  ;;  %v947_v12 = vsel %vm363_vm1, %v943_v62, -inf  ;;  %vm630_vm0 = vcmp.eq.s32.totalorder %v1595_v3, 13  ;;  %vm710_vm15 = vcmp.eq.s32.totalorder %v1595_v3, 17 }
  0xaf   : > { %905 = vmax.xlane.f32.xlu0 %v904_v34  ;;  %925 = vmax.xlane.f32.xlu2 %v924_v40  ;;  %vm730_vm5 = vcmp.eq.s32.totalorder %v1595_v3, 18 }
  0xb0   : > { %848 = vmax.xlane.f32.xlu1 %v847_v44 }
  0xb2   : > { %v486_v49 = vpop.xlane.xlu0 %485  ;;  %v506_v50 = vpop.xlane.xlu2 %505 }
  0xb3   : > { %v493_v52 = vsel %vm490_vm6, %v486_v49, 0.0  ;;  %v429_v53 = vpop.xlane.xlu1 %428  ;;  %v513_v54 = vsel %vm510_vm13, %v506_v50, 0.0 }
  0xb4   : > { %v495_v55 = vadd.f32 %v493_v52, %v475_v43  ;;  %v434_v56 = vsel %vm430_vm11, %v429_v53, 0.0  ;;  %vm610_vm11 = vcmp.eq.s32.totalorder %v1595_v3, 12 }
  0xb5   : > { %v436_v59 = vadd.f32 %v434_v56, %v416_v45 }
  0xb6   : > { %v515_v61 = vadd.f32 %v513_v54, %v495_v55 }
  0xb7   : > { %868 = vmax.xlane.f32.xlu0 %v867_v57  ;;  %888 = vmax.xlane.f32.xlu2 %v887_v58 }
  0xb8   : > { %945 = vmax.xlane.f32.xlu1 %v944_v60 }
  0xba   : > { %v449_v63 = vpop.xlane.xlu0 %448  ;;  %v469_v0 = vpop.xlane.xlu2 %468 }
  0xbb   : > { %v454_v6 = vsel %vm450_vm4, %v449_v63, 0.0  ;;  %v526_v7 = vpop.xlane.xlu1 %525  ;;  %v474_v8 = vsel %vm470_vm2, %v469_v0, 0.0  ;;  %vm670_vm4 = vcmp.eq.s32.totalorder %v1595_v3, 15  ;;  %vm690_vm2 = vcmp.eq.s32.totalorder %v1595_v3, 16  ;;  %v960_v0 = vld [vmem:[%s2333_s3 + $0x18] sm:$0x3f] }
  0xbc   : > { %v456_v9 = vadd.f32 %v454_v6, %v436_v59  ;;  %v533_v10 = vsel %vm530_vm3, %v526_v7, 0.0  ;;  %1254 = vmatpush.msk.msra.mxu0 %vm968_vm10, %v960_v0  ;;  %1259 = vmatpush.msk.msra.mxu2 %vm968_vm10, %v960_v0  ;;  %v1010_v0 = vld [vmem:[%s2332_s2 + $0x48] sm:$0xff]  ;;  %vm961_vm10 = vcmask 244736  }
  0xbd   : > { %v535_v13 = vadd.f32 %v533_v10, %v515_v61 }
  0xbe   : > { %v476_v15 = vadd.f32 %v474_v8, %v456_v9  ;;  %985 = vmatpush.msra.mxu0 %v959_v5  ;;  %1068 = vmatpush.msra.mxu2 %v959_v5 }
  0xbf   : > { %908 = vmax.xlane.f32.xlu0 %v907_v11  ;;  %948 = vmax.xlane.f32.xlu2 %v947_v12 }
  0xc0   : > { %928 = vmax.xlane.f32.xlu1 %v927_v14 }
  0xc2   : > { %v546_v4 = vpop.xlane.xlu0 %545  ;;  %v566_v16 = vpop.xlane.xlu2 %565 }
  0xc3   : > { %v553_v17 = vsel %vm550_vm7, %v546_v4, 0.0  ;;  %v489_v18 = vpop.xlane.xlu1 %488  ;;  %v573_v42 = vsel %vm570_vm12, %v566_v16, 0.0  ;;  %v958_v16 = vld [vmem:[%s2333_s3 + $0x8] sm:$0xff] }
  0xc4   : > { %v555_v19 = vadd.f32 %v553_v17, %v535_v13  ;;  %v494_v20 = vsel %vm490_vm6, %v489_v18, 0.0  ;;  %986 = vmatpush.msra.mxu0 %v958_v16  ;;  %1069 = vmatpush.msra.mxu2 %v958_v16  ;;  %vm750_vm6 = vcmp.eq.s32.totalorder %v1595_v3, 19  ;;  %v1007_v16 = vld [vmem:[%s2332_s2 + $0x30] sm:$0xff] }
  0xc5   : > { %v496_v21 = vadd.f32 %v494_v20, %v476_v15  ;;  %v957_v20 = vld [vmem:[%s2333_s3] sm:$0xff] }
  0xc6   : > { %v575_v46 = vadd.f32 %v573_v42, %v555_v19  ;;  %987 = vmatpush.msra.mxu0 %v957_v20  ;;  %1070 = vmatpush.msra.mxu2 %v957_v20 }
  0xca   : > { %v509_v22 = vpop.xlane.xlu0 %508  ;;  %v529_v23 = vpop.xlane.xlu2 %528 }
  0xcb   : > { %v514_v24 = vsel %vm510_vm13, %v509_v22, 0.0  ;;  %v586_v25 = vpop.xlane.xlu1 %585  ;;  %v534_v50 = vsel %vm530_vm3, %v529_v23, 0.0  ;;  %vm770_vm13 = vcmp.eq.s32.totalorder %v1595_v3, 20  ;;  %vm790_vm3 = vcmp.eq.s32.totalorder %v1595_v3, 21 }
  0xcc   : > { %v516_v26 = vadd.f32 %v514_v24, %v496_v21  ;;  %v593_v43 = vsel %vm590_vm9, %v586_v25, 0.0 }
  0xcd   : > { %v595_v49 = vadd.f32 %v593_v43, %v575_v46  ;;  %v1014_v46 = vld [vmem:[%s2332_s2 + $0x68] sm:$0xff] }
  0xce   : > { %v536_v54 = vadd.f32 %v534_v50, %v516_v26 }
  0xd2   : > { %v606_v27 = vpop.xlane.xlu0 %605  ;;  %v626_v28 = vpop.xlane.xlu2 %625 }
  0xd3   : > { %v549_v29 = vpop.xlane.xlu1 %548  ;;  %v613_v48 = vsel %vm610_vm11, %v606_v27, 0.0  ;;  %v633_v52 = vsel %vm630_vm0, %v626_v28, 0.0 }
  0xd4   : > { %v615_v51 = vadd.f32 %v613_v48, %v595_v49  ;;  %v554_v53 = vsel %vm550_vm7, %v549_v29, 0.0  ;;  %vm810_vm7 = vcmp.eq.s32.totalorder %v1595_v3, 22 }
  0xd5   : > { %v556_v61 = vadd.f32 %v554_v53, %v536_v54 }
  0xd6   : > { %v635_v58 = vadd.f32 %v633_v52, %v615_v51  ;;  %v1013_v52 = vld [vmem:[%s2332_s2 + $0x60] sm:$0xff] }
  0xda   : > { %v569_v30 = vpop.xlane.xlu0 %568  ;;  %v589_v31 = vpop.xlane.xlu2 %588 }
  0xdb   : > { %v646_v32 = vpop.xlane.xlu1 %645  ;;  %v574_v59 = vsel %vm570_vm12, %v569_v30, 0.0  ;;  %v594_v6 = vsel %vm590_vm9, %v589_v31, 0.0  ;;  %vm830_vm12 = vcmp.eq.s32.totalorder %v1595_v3, 23  ;;  %vm850_vm9 = vcmp.eq.s32.totalorder %v1595_v3, 24 }
  0xdc   : > { %v653_v55 = vsel %vm650_vm14, %v646_v32, 0.0  ;;  %v576_v63 = vadd.f32 %v574_v59, %v556_v61  ;;  %v1011_v59 = vld [vmem:[%s2332_s2 + $0x50] sm:$0xff] }
  0xdd   : > { %v655_v62 = vadd.f32 %v653_v55, %v635_v58  ;;  %v1012_v55 = vld [vmem:[%s2332_s2 + $0x58] sm:$0xff] }
  0xde   : > { %v596_v10 = vadd.f32 %v594_v6, %v576_v63 }
  0xe2   : > { %v666_v33 = vpop.xlane.xlu0 %665  ;;  %v686_v34 = vpop.xlane.xlu2 %685 }
  0xe3   : > { %v609_v35 = vpop.xlane.xlu1 %608  ;;  %v673_v2 = vsel %vm670_vm4, %v666_v33, 0.0  ;;  %v693_v8 = vsel %vm690_vm2, %v686_v34, 0.0 }
  0xe4   : > { %v675_v7 = vadd.f32 %v673_v2, %v655_v62  ;;  %v614_v9 = vsel %vm610_vm11, %v609_v35, 0.0  ;;  %vm870_vm11 = vcmp.eq.s32.totalorder %v1595_v3, 25 }
  0xe5   : > { %v616_v17 = vadd.f32 %v614_v9, %v596_v10  ;;  %v1009_v10 = vld [vmem:[%s2332_s2 + $0x40] sm:$0xff] }
  0xe6   : > { %v695_v14 = vadd.f32 %v693_v8, %v675_v7 }
  0xea   : > { %v629_v36 = vpop.xlane.xlu0 %628  ;;  %v2059_v37 = vpop.xlane.xlu2 %648 }
  0xeb   : > { %v706_v38 = vpop.xlane.xlu1 %705  ;;  %v634_v15 = vsel %vm630_vm0, %v629_v36, 0.0  ;;  %v654_v22 = vsel %vm650_vm14, %v2059_v37, 0.0  ;;  %vm890_vm0 = vcmp.eq.s32.totalorder %v1595_v3, 26  ;;  %vm910_vm14 = vcmp.eq.s32.totalorder %v1595_v3, 27 }
  0xec   : > { %v713_v11 = vsel %vm710_vm15, %v706_v38, 0.0  ;;  %v636_v21 = vadd.f32 %v634_v15, %v616_v17 }
  0xed   : > { %v715_v19 = vadd.f32 %v713_v11, %v695_v14 }
  0xee   : > { %v656_v26 = vadd.f32 %v654_v22, %v636_v21 }
  0xf2   : > { %v726_v39 = vpop.xlane.xlu0 %725  ;;  %v2061_v40 = vpop.xlane.xlu2 %745 }
  0xf3   : > { %v2063_v41 = vpop.xlane.xlu1 %668  ;;  %v733_v18 = vsel %vm730_vm5, %v726_v39, 0.0  ;;  %v753_v24 = vsel %vm750_vm6, %v2061_v40, 0.0 }
  0xf4   : > { %v735_v23 = vadd.f32 %v733_v18, %v715_v19  ;;  %v674_v25 = vsel %vm670_vm4, %v2063_v41, 0.0  ;;  %vm930_vm4 = vcmp.eq.s32.totalorder %v1595_v3, 28 }
  0xf5   : > { %v676_v33 = vadd.f32 %v674_v25, %v656_v26 }
  0xf6   : > { %v755_v30 = vadd.f32 %v753_v24, %v735_v23 }
  0xfa   : > { %v2072_v44 = vpop.xlane.xlu0 %688  ;;  %v2074_v45 = vpop.xlane.xlu2 %708 }
  0xfb   : > { %v766_v47 = vpop.xlane.xlu1 %765  ;;  %v694_v31 = vsel %vm690_vm2, %v2072_v44, 0.0  ;;  %v714_v37 = vsel %vm710_vm15, %v2074_v45, 0.0  ;;  %v1015_v45 = vld [vmem:[%s2332_s2 + $0x70] sm:$0xff]  ;;  %vm950_vm2 = vcmp.eq.s32.totalorder %v1595_v3, 29 }
  0xfc   : > { %v773_v27 = vsel %vm770_vm13, %v766_v47, 0.0  ;;  %v696_v36 = vadd.f32 %v694_v31, %v676_v33  ;;  %1023 = vmatpush.msra.mxu1 %v1015_v45  ;;  %1267 = vmatpush.msra.mxu3 %v1015_v45 }
  0xfd   : > { %v775_v35 = vadd.f32 %v773_v27, %v755_v30 }
  0xfe   : > { %v716_v41 = vadd.f32 %v714_v37, %v696_v36  ;;  %1024 = vmatpush.msra.mxu1 %v1014_v46  ;;  %1268 = vmatpush.msra.mxu3 %v1014_v46  ;;  %v1001_v46 = vld [vmem:[%s2332_s2] sm:$0xff] }
 0x100   : > { %1025 = vmatpush.msra.mxu1 %v1013_v52  ;;  %1269 = vmatpush.msra.mxu3 %v1013_v52  ;;  %v1373_v52 = vld [vmem:[%s1582_s23] sm:$0xff] }
 0x102   : > { %v786_v56 = vpop.xlane.xlu0 %785  ;;  %v806_v57 = vpop.xlane.xlu2 %805  ;;  %1026 = vmatpush.msra.mxu1 %v1012_v55  ;;  %1270 = vmatpush.msra.mxu3 %v1012_v55 }
 0x103   : > { %v729_v60 = vpop.xlane.xlu1 %728  ;;  %v793_v34 = vsel %vm790_vm3, %v786_v56, 0.0  ;;  %v813_v39 = vsel %vm810_vm7, %v806_v57, 0.0 }
 0x104   : > { %v795_v38 = vadd.f32 %v793_v34, %v775_v35  ;;  %v734_v40 = vsel %vm730_vm5, %v729_v60, 0.0  ;;  %1027 = vmatpush.msra.mxu1 %v1011_v59  ;;  %1271 = vmatpush.msra.mxu3 %v1011_v59 }
 0x105   : > { %v736_v50 = vadd.f32 %v734_v40, %v716_v41  ;;  %v1005_v40 = vld [vmem:[%s2332_s2 + $0x20] sm:$0xff]  ;;  %v1004_v41 = vld [vmem:[%s2332_s2 + $0x18] sm:$0xff] }
 0x106   : > { %v815_v47 = vadd.f32 %v813_v39, %v795_v38  ;;  %1028 = vmatpush.msra.mxu1 %v1010_v0  ;;  %1272 = vmatpush.msra.mxu3 %v1010_v0  ;;  %v1006_v39 = vld [vmem:[%s2332_s2 + $0x28] sm:$0xff] }
 0x108   : > { %1029 = vmatpush.msra.mxu1 %v1009_v10  ;;  %1273 = vmatpush.msra.mxu3 %v1009_v10 }
 0x10a   : > { %v749_v12 = vpop.xlane.xlu0 %748  ;;  %v769_v13 = vpop.xlane.xlu2 %768 }
 0x10b   : > { %v826_v4 = vpop.xlane.xlu1 %825  ;;  %v754_v48 = vsel %vm750_vm6, %v749_v12, 0.0  ;;  %v774_v56 = vsel %vm770_vm13, %v769_v13, 0.0  ;;  %v1008_v13 = vld [vmem:[%s2332_s2 + $0x38] sm:$0xff] }
 0x10c   : > { %v833_v42 = vsel %vm830_vm12, %v826_v4, 0.0  ;;  %v756_v54 = vadd.f32 %v754_v48, %v736_v50  ;;  %1030 = vmatpush.msra.mxu1 %v1008_v13  ;;  %1274 = vmatpush.msra.mxu3 %v1008_v13  ;;  %v343_v48 = vstv %s1253_s6  ;;  %v1046_v50 = vld [vmem:[%s1587_s30 + $0x8] sm:$0xff] }
 0x10d   : > { %v835_v53 = vadd.f32 %v833_v42, %v815_v47  ;;  %v1003_v42 = vld [vmem:[%s2332_s2 + $0x10] sm:$0xff]  ;;  %v2247_v47 = vshrl.u32 %v340_v1, 7 }
 0x10e   : > { %v776_v61 = vadd.f32 %v774_v56, %v756_v54  ;;  %1031 = vmatpush.msra.mxu1 %v1007_v16  ;;  %1275 = vmatpush.msra.mxu3 %v1007_v16 }
 0x10f   : > { %v342_v54 = vadd.s32 8, %v2247_v47 }
 0x110   : > { %1032 = vmatpush.msra.mxu1 %v1006_v39  ;;  %1276 = vmatpush.msra.mxu3 %v1006_v39 }
 0x111   : > { %v345_v56 = vadd.s32 %v343_v48, %v342_v54 }
 0x112   : > { %v846_v28 = vpop.xlane.xlu0 %845  ;;  %v866_v29 = vpop.xlane.xlu2 %865  ;;  %1033 = vmatpush.msra.mxu1 %v1005_v40  ;;  %1277 = vmatpush.msra.mxu3 %v1005_v40 }
 0x113   : > { %v789_v32 = vpop.xlane.xlu1 %788  ;;  %v853_v51 = vsel %vm850_vm9, %v846_v28, 0.0  ;;  %v873_v58 = vsel %vm870_vm11, %v866_v29, 0.0  ;;  %vm347_vm5 = vcmp.lt.s32.totalorder %v345_v56, 40 }
 0x114   : > { %v855_v57 = vadd.f32 %v853_v51, %v835_v53  ;;  %v794_v60 = vsel %vm790_vm3, %v789_v32, 0.0  ;;  %1034 = vmatpush.msra.mxu1 %v1004_v41  ;;  %1278 = vmatpush.msra.mxu3 %v1004_v41  ;;  %v1048_v51 = vcvt.s32.f32 %v1046_v50 }
 0x115   : > { %v796_v8 = vadd.f32 %v794_v60, %v776_v61 }
 0x116   : > { %v875_v5 = vadd.f32 %v873_v58, %v855_v57  ;;  %1035 = vmatpush.msra.mxu1 %v1003_v42  ;;  %1279 = vmatpush.msra.mxu3 %v1003_v42  ;;  %v1374_v58 = vld [vmem:[%s1582_s23 + $0x8] sm:$0xff] }
 0x117   : > { %v353_v59 = vsel %vm347_vm5, %v1374_v58, 0.0 }
 0x11a   : > { %v809_v43 = vpop.xlane.xlu0 %808  ;;  %v829_v44 = vpop.xlane.xlu2 %828 }
 0x11b   : > { %v886_v49 = vpop.xlane.xlu1 %885  ;;  %v814_v6 = vsel %vm810_vm7, %v809_v43, 0.0  ;;  %v834_v14 = vsel %vm830_vm12, %v829_v44, 0.0  ;;  %v1045_v43 = vld [vmem:[%s1587_s30] sm:$0xff]  ;;  %v1002_v44 = vld [vmem:[%s2332_s2 + $0x8] sm:$0xff] }
 0x11c   : > { %v893_v2 = vsel %vm890_vm0, %v886_v49, 0.0  ;;  %v816_v12 = vadd.f32 %v814_v6, %v796_v8  ;;  %v1047_v45 = vcvt.s32.f32 %v1045_v43  ;;  %1036 = vmatpush.msra.mxu1 %v1002_v44  ;;  %1280 = vmatpush.msra.mxu3 %v1002_v44  ;;  %v2250_v49 = vadd.s32 %v343_v48, %v2247_v47 }
 0x11d   : > { %v895_v11 = vadd.f32 %v893_v2, %v875_v5 }
 0x11e   : > { %v836_v18 = vadd.f32 %v834_v14, %v816_v12  ;;  %1260 = vmatmul.msk.f32.vlgmr.msra.gmra.mxu2 %vm961_vm10, %v1047_v45  ;;  %1037 = vmatpush.msra.mxu1 %v1001_v46  ;;  %vm346_vm15 = vcmp.lt.s32.totalorder %v2250_v49, 40 }
 0x11f   : > { %1281 = vmatpush.msra.mxu3 %v1001_v46  ;;  %v352_v53 = vsel %vm346_vm15, %v1373_v52, 0.0 }
 0x122   : > { %v906_v62 = vpop.xlane.xlu0 %905  ;;  %v926_v63 = vpop.xlane.xlu2 %925 }
 0x123   : > { %v849_v7 = vpop.xlane.xlu1 %848  ;;  %v913_v9 = vsel %vm910_vm14, %v906_v62, 0.0  ;;  %v933_v4 = vsel %vm930_vm4, %v926_v63, 0.0 }
 0x124   : > { %v915_v15 = vadd.f32 %v913_v9, %v895_v11  ;;  %v854_v17 = vsel %vm850_vm9, %v849_v7, 0.0 }
 0x125   : > { %v856_v24 = vadd.f32 %v854_v17, %v836_v18 }
 0x126   : > { %v935_v21 = vadd.f32 %v933_v4, %v915_v15  ;;  %1261 = vmatmul.msk.f32.gmra.mxu2 %vm961_vm10, %v1048_v51 }
 0x12a   : > { %v869_v19 = vpop.xlane.xlu0 %868  ;;  %v889_v20 = vpop.xlane.xlu2 %888 }
 0x12b   : > { %v874_v22 = vsel %vm870_vm11, %v869_v19, 0.0  ;;  %v946_v23 = vpop.xlane.xlu1 %945  ;;  %v894_v28 = vsel %vm890_vm0, %v889_v20, 0.0 }
 0x12c   : > { %v953_v25 = vsel %vm950_vm2, %v946_v23, 0.0  ;;  %v876_v27 = vadd.f32 %v874_v22, %v856_v24 }
 0x12d   : > { %v2209_v26 = vadd.f32 %v953_v25, %v935_v21 }
 0x12e   : > { %v896_v29 = vadd.f32 %v894_v28, %v876_v27 }
 0x12f   : > { %1255 = vmatmul.msk.f32.vlgmr.msra.gmra.mxu0 %vm961_vm10, %v2209_v26 }
 0x132   : > { %v909_v30 = vpop.xlane.xlu0 %908  ;;  %v949_v31 = vpop.xlane.xlu2 %948 }
 0x133   : > { %v914_v32 = vsel %vm910_vm14, %v909_v30, 0.0  ;;  %v929_v33 = vpop.xlane.xlu1 %928  ;;  %v954_v36 = vsel %vm950_vm2, %v949_v31, 0.0  ;;  %v1106_v30 = vld [vmem:[#allocation2] sm:$0xff] }
 0x134   : > { %v916_v34 = vadd.f32 %v914_v32, %v896_v29  ;;  %v934_v35 = vsel %vm930_vm4, %v929_v33, 0.0 }
 0x136   : > { %v936_v37 = vadd.f32 %v934_v35, %v916_v34  ;;  %v1107_v35 = vld [vmem:[#allocation2 + $0x8] sm:$0xff] }
 0x138   : > { %v2221_v38 = vadd.f32 %v954_v36, %v936_v37 }
 0x13a   : > { %1256 = vmatmul.msk.f32.gmra.mxu0 %vm961_vm10, %v2221_v38 }
 0x1a1   : > { %v1072_v0 = vpop.f32.mrf.mxu2 }
 0x1a2   : > { %v1283_v5 = vceil.f32 %v1072_v0  ;;  %v1284_v6 = vfloor.f32 %v1072_v0  ;;  %vm1282_vm6 = vcmp.lt.s32.totalorder %v1072_v0, 0 }
 0x1a4   : > { %v1285_v7 = vsel %vm1282_vm6, %v1283_v5, %v1284_v6 }
 0x1a5   : > { %v1286_v8 = vcvt.f32.s32 %v1285_v7 }
 0x1a7   : > { %vm1080_vm13 = vcmp.eq.s32.totalorder %v1595_v3, %v1286_v8 }
 0x1a8   : > { %v1082_v9 = vsel %vm1080_vm13, %v352_v53, 0.0 }
 0x1a9   : > { %v1084_v10 = vsel %vm363_vm1, %v1082_v9, 0.0  ;;  %v1075_v11 = vpop.f32.mrf.mxu2 }
 0x1aa   : > { %1085 = vadd.xlane.f32.xlu0 %v1084_v10  ;;  %v1288_v12 = vceil.f32 %v1075_v11  ;;  %v1289_v13 = vfloor.f32 %v1075_v11  ;;  %vm1287_vm3 = vcmp.lt.s32.totalorder %v1075_v11, 0 }
 0x1ac   : > { %v989_v55 = vpop.f32.mrf.mxu0  ;;  %v1290_v14 = vsel %vm1287_vm3, %v1288_v12, %v1289_v13 }
 0x1ad   : > { %v995_v1 = vsub.f32 %v352_v53, %v989_v55  ;;  %v1291_v15 = vcvt.f32.s32 %v1290_v14 }
 0x1af   : > { %v997_v57 = vmul.f32 1.442695, %v995_v1  ;;  %vm1081_vm7 = vcmp.eq.s32.totalorder %v1595_v3, %v1291_v15 }
 0x1b0   : > { %v1083_v4 = vsel %vm1081_vm7, %v353_v59, 0.0 }
 0x1b1   : > { %1365 = vpow2.f32 %v997_v57  ;;  %v1087_v16 = vsel %vm363_vm1, %v1083_v4, 0.0 }
 0x1b2   : > { %1088 = vadd.xlane.f32.xlu1 %v1087_v16 }
 0x1b7   : > { %v1366_v60 = vpop.eup %1365  ;;  %v992_v61 = vpop.f32.mrf.mxu0 }
 0x1b8   : > { %v996_v2 = vsub.f32 %v353_v59, %v992_v61  ;;  %1257 = vmatmul.msk.f32.vlgmr.msra.gmra.mxu1 %vm363_vm1, %v1366_v60 }
 0x1ba   : > { %v999_v62 = vmul.f32 1.442695, %v996_v2 }
 0x1bc   : > { %1367 = vpow2.f32 %v999_v62 }
 0x1c2   : > { %v1368_v63 = vpop.eup %1367 }
 0x1c3   : > { %1258 = vmatmul.msk.f32.vlgmr.msra.gmra.mxu3 %vm363_vm1, %v1368_v63  ;;  %vm1110_vm1 = vcmask 7168  }
 0x21d   : > { %v1086_v28 = vpop.xlane.xlu0 %1085 }
 0x225   : > { %v1089_v33 = vpop.xlane.xlu1 %1088 }
 0x235   : > { %v1039_v17 = vpop.f32.mrf.mxu1 }
 0x236   : > { %1369 = vlog2.f32 %v1039_v17 }
 0x23c   : > { %v1370_v18 = vpop.eup %1369 }
 0x23d   : > { %v1091_v19 = vmul.f32 0.6931472, %v1370_v18 }
 0x23f   : > { %v1094_v20 = vadd.f32 %v1091_v19, %v2209_v26 }
 0x241   : > { %v1096_v21 = vsel %vm961_vm10, %v1094_v20, 0.0 }
 0x242   : > { %1097 = vadd.xlane.f32.xlu2 %v1096_v21 }
 0x246   : > { %v1042_v22 = vpop.f32.mrf.mxu3 }
 0x247   : > { %1371 = vlog2.f32 %v1042_v22 }
 0x24d   : > { %v1372_v23 = vpop.eup %1371 }
 0x24e   : > { %v1093_v24 = vmul.f32 0.6931472, %v1372_v23 }
 0x250   : > { %v1095_v25 = vadd.f32 %v1093_v24, %v2221_v38 }
 0x252   : > { %v1099_v27 = vsel %vm961_vm10, %v1095_v25, 0.0 }
 0x253   : > { %1100 = vadd.xlane.f32.xlu0 %v1099_v27 }
 0x2b5   : > { %v1098_v29 = vpop.xlane.xlu2 %1097 }
 0x2b6   : > { %v1102_v31 = vsub.f32 %v1098_v29, %v1086_v28 }
 0x2b8   : > { %v1104_v26 = vsel %vm346_vm15, %v1102_v31, 0.0 }
 0x2b9   : > { %v1108_v32 = vadd.f32 %v1106_v30, %v1104_v26 }
 0x2bb   : > { %1111 = vst.msk [vmem:[#allocation2] sm:$0xff] %vm1110_vm1, %v1108_v32 }
 0x2c6   : > { %v1101_v34 = vpop.xlane.xlu0 %1100 }
 0x2c7   : > { %v1103_v36 = vsub.f32 %v1101_v34, %v1089_v33 }
 0x2c8   : > { %1116 = sbr.rel (%p1262_p1) target bundleno = 856 (0x358), region = 44 }
 0x2c9   : > { %v1105_v37 = vsel %vm347_vm5, %v1103_v36, 0.0 }
 0x2ca   : > { %v1109_v38 = vadd.f32 %v1107_v35, %v1105_v37 }
 0x2cc   : > { %1112 = vst.msk [vmem:[#allocation2 + $0x8] sm:$0xff] %vm1110_vm1, %v1109_v38 }
 0x2cd   : > { %v1117_v39 = vld [vmem:[#allocation2] sm:$0xff]  ;;  %v1473_v41 = vmov 0   ;;  %vm1128_vm12 = vcmp.eq.s32.totalorder %v2247_v47, 0 }
 0x2ce   : > { %1375 = vset.pattern.permute.xlu0 %v1473_v41  ;;  %v1119_v42 = vsel %vm1110_vm1, %v1117_v39, 0.0  ;;  %vm1129_vm9 = vmand %vm1128_vm12, %vm370_vm8 }
 0x2d3   : > { %v1118_v40 = vld [vmem:[#allocation2 + $0x8] sm:$0xff] }
 0x2d4   : > { %v1120_v43 = vsel %vm1110_vm1, %v1118_v40, 0.0 }
 0x2d5   : > { %v1121_v44 = vadd.f32 %v1120_v43, %v1119_v42 }
 0x2d7   : > { %v1122_v45 = vrot.slane %v1121_v44, 4 }
 0x2d9   : > { %v1123_v46 = vadd.f32 %v1122_v45, %v1121_v44 }
 0x2db   : > { %v1124_v48 = vrot.slane %v1123_v46, 2 }
 0x2dd   : > { %v1125_v49 = vadd.f32 %v1124_v48, %v1123_v46 }
 0x2df   : > { %v1126_v50 = vrot.slane %v1125_v49, 1 }
 0x2e1   : > { %v1127_v51 = vadd.f32 %v1126_v50, %v1125_v49 }
 0x2e3   : > { %1132 = vperm.xlu0 %1375, %v1127_v51  }
 0x355   : > { %v1133_v52 = vpop.permute.xlu0 %1132 }
 0x356   : > { %v1135_v53 = vsel %vm1129_vm9, %v1133_v52, 0.0 }
 0x357   : > { %1136 = vst [vmem:[%s283_s7] sm:$0xff] %v1135_v53 }
 0x358 PF: > { %s1264_s18 = sshll.u32 %s1458_s19, 3  ;;  %s1150_s12 = sshll.u32 %s283_s7, 4  ;;  %s1151_s12 = int_to_ptr.vmem [resolvable:$true] %s1150_s12 }
 0x359   : > { %s1148_s30 = scalar_lea.hbm %s2334_s4, %s1264_s18  ;;  %s2396_s14 = sand.u32 1, %s1446_s16  }
 0x35a   : > { %s1152_s13 = sshll.u32 %s1148_s30, 4  ;;  %s1138_s24 = scalar_lea.sflag [#allocation4], %s2396_s14  ;;  %s1153_s13 = int_to_ptr.hbm [resolvable:$true] %s1152_s13 }
 0x35b   : > { %s1390_s29 = sshra.s32 %s1153_s13, 4  ;;  %s1396_s6 = scalar_lea.hbm %s2334_s4, 16  ;;  %s1391_s29 = int_to_ptr.hbm [resolvable:$true] %s1390_s29 }
 0x35c   : > { %s1392_s10 = scalar_lea.hbm %s1391_s29, 8  ;;  %p1397_p6 = scmp.lt.s32.totalorder %s1391_s29, %s2334_s4 }
 0x35d   : > { %p1393_p2 = scmp.ne.s32.totalorder %s1391_s29, %s1392_s10  ;;  %p1398_p7 = scmp.lt.s32.totalorder %s1396_s6, %s1392_s10 }
 0x35f   : > { %p1394_p4 = pnand %p1393_p2, %p1548_p3  ;;  %p1399_p8 = por %p1398_p7, %p1397_p6 }
 0x361   : > { %p1395_p5 = pneg %p1394_p4 }
 0x363   : > { %p1400_p10 = pnand %p1399_p8, %p1395_p5 }
 0x365   : > { %1403 = shalt.err (!%p1400_p10)
}
 0x366   : > { %1292 = dma.vmem_to_hbm [thread:$0]  (%p1548_p3), %s1151_s12, 128, %s1153_s13, %s1138_s24  }
 0x367 PF: > { %p1298_p11 = scmp.ge.s32.totalorder %s1470_s22, 2  ;;  %s1164_s8 = sand.u32 1, %s1442_s15  }
 0x368   : > { %s1165_s7 = scalar_lea.sflag [#allocation4], %s1164_s8 }
 0x369   : > { %p1295_p12 = pnand %p1298_p11, %p1558_p9 }
 0x36b   : > { %p1296_p13 = pneg %p1295_p12 }
 0x36d   : > { %1437 = dma.done.wait (%p1296_p13), %s1165_s7, 128  }
 0x36e   : > { %1439 = vsyncadd (%p1296_p13), %s1165_s7, 4294967168  ;;  %s17_s22 = sadd.s32 1, %s1470_s22   ;;  %s2397_s15 = smov %s1446_s16 }
 0x36f   : > { %p14_p0 = scmp.ge.s32.totalorder %s17_s22, 6   ;;  %s2398_s16 = smov %s1450_s17 }
 0x370   : > { %s2399_s17 = smov %s1566_s5  ;;  %s2400_s18 = smov %s1462_s20 }
 0x371   : > { %s2401_s19 = smov %s1466_s21  ;;  %s2402_s20 = smov %s2405_s25 }
 0x372   : > { %s2403_s21 = smov %s2409_s26  ;;  %16 = sbr.rel (!%p14_p0) target bundleno = 5 (0x5), region = 82 }
 0x377   :  { %1171 = vsyncpa [#allocation4], 1 }
 0x378   :  { %1173 = vsyncpa [#allocation4 + $0x1], 1 }

</bundles_post_ra>
